<compile_context>
chip_gen: v7x
topology: tpu7x:2x2x1
jax: 0.10.0
libtpu: 0.0.40
codegen_flags: <defaults>
</compile_context>

<pallas_src>
import math

import jax
import jax.numpy as jnp
from jax.experimental import pallas as pl
from jax.experimental.pallas import tpu as pltpu


# ---------------------------------------------------------------------------
# Fused kernel
# ---------------------------------------------------------------------------

def _make_encoder_kernel(seq, dim, n_heads):
    dk = dim // n_heads
    rph = seq // n_heads          # rows of the recombined matrix per head
    ngrp = dim // seq             # lane groups per head in the recombine
    scale = 1.0 / math.sqrt(dk)
    eps = 1e-5                    # torch.nn.LayerNorm default

    def layer_norm(y, gamma, beta):
        mu = jnp.mean(y, axis=-1, keepdims=True)
        d = y - mu
        var = jnp.mean(d * d, axis=-1, keepdims=True)
        return d * jax.lax.rsqrt(var + eps) * gamma + beta

    def kernel(x_ref, wq_ref, wk_ref, wvp_ref, wfc_ref,
               g1_ref, be1_ref, w1_ref, bl1_ref, g2_ref, be2_ref,
               o_ref, scr_ref):
        x = x_ref[...]                                                  # [S, D]

        # Q / K / V projections: three big lane-dense MXU matmuls.
        q = jnp.dot(x, wq_ref[...], preferred_element_type=jnp.float32)
        k = jnp.dot(x, wk_ref[...], preferred_element_type=jnp.float32)
        v = jnp.dot(x, wvp_ref[...], preferred_element_type=jnp.float32)

        # Per-head attention (static Python unroll; n_heads is small).
        for h in range(n_heads):
            qh = q[:, h * dk:(h + 1) * dk]                              # [S, dk]
            kh = k[:, h * dk:(h + 1) * dk]
            vh = v[:, h * dk:(h + 1) * dk]                              # (col-permuted)

            s = jnp.dot(qh, kh.T, preferred_element_type=jnp.float32) * scale
            s = s - jnp.max(s, axis=-1, keepdims=True)
            e = jnp.exp(s)
            attn = e / jnp.sum(e, axis=-1, keepdims=True)               # [S, S]

            ctx = jnp.dot(attn, vh, preferred_element_type=jnp.float32) # [S, dk]
            ctx_t = ctx.T                                               # [dk, S]

            # The module's context.transpose(1,2).reshape(-1, H*dk):
            # with the host-side W_V column permutation this is exactly
            # contiguous sub-block copies into the scrambled buffer.
            for g in range(ngrp):
                scr_ref[h * rph:(h + 1) * rph, g * seq:(g + 1) * seq] = (
                    ctx_t[g * rph:(g + 1) * rph, :])

        scrambled = scr_ref[...]                                        # [S, D]
        att_out = jnp.dot(scrambled, wfc_ref[...],
                          preferred_element_type=jnp.float32)           # fc (no bias)

        x1 = layer_norm(att_out + x, g1_ref[...], be1_ref[...])         # AN1
        l1 = jnp.dot(x1, w1_ref[...],
                     preferred_element_type=jnp.float32) + bl1_ref[...] # l1
        o_ref[...] = layer_norm(l1 + x1, g2_ref[...], be2_ref[...])     # AN2

    return kernel


# ---------------------------------------------------------------------------
# Wrapper
# ---------------------------------------------------------------------------

def encoder_layer_forward(x, params, n_heads):
    """x: [S, D] float32.  Weight matrices are in matmul layout (y = x @ W),
    i.e. the transpose of nn.Linear.weight.  Biases / LN params are [1, D]."""
    S, D = x.shape
    assert D % n_heads == 0 and S % n_heads == 0 and D % S == 0, (
        "fused recombine path requires n_heads | seq and seq | dim")
    dk = D // n_heads
    rph = S // n_heads
    ngrp = D // S

    # Host-side column permutation of W_V (per head) that turns the module's
    # transpose(1,2).reshape recombine into contiguous block copies in-kernel.
    sigma = [(p % rph) * ngrp + (p // rph) for p in range(dk)]
    col_idx = jnp.asarray(
        [h * dk + sp for h in range(n_heads) for sp in sigma], jnp.int32)
    wv_perm = params["wv"][:, col_idx]

    kernel = _make_encoder_kernel(S, D, n_heads)

    flops = 2 * S * D * D * 5 + n_heads * (2 * 2 * S * S * dk)
    transcendentals = n_heads * S * S + 2 * S
    bytes_accessed = 4 * (2 * S * D + 5 * D * D + 6 * D)

    return pl.pallas_call(
        kernel,
        out_shape=jax.ShapeDtypeStruct((S, D), jnp.float32),
        in_specs=[pl.BlockSpec(memory_space=pltpu.MemorySpace.VMEM)] * 11,
        out_specs=pl.BlockSpec(memory_space=pltpu.MemorySpace.VMEM),
        scratch_shapes=[pltpu.VMEM((S, D), jnp.float32)],
        cost_estimate=pl.CostEstimate(flops=flops,
                                      transcendentals=transcendentals,
                                      bytes_accessed=bytes_accessed),
    )(x, params["wq"], params["wk"], wv_perm, params["wfc"],
      params["ln1_g"], params["ln1_b"], params["w1"], params["b1"],
      params["ln2_g"], params["ln2_b"])


# ---------------------------------------------------------------------------
# Pure-JAX reference (mirrors the PyTorch forward op-for-op)
# ---------------------------------------------------------------------------

def encoder_layer_ref(x, params, n_heads):
    S, D = x.shape
    dk = D // n_heads

    q = (x @ params["wq"]).reshape(S, n_heads, dk).transpose(1, 0, 2)
    k = (x @ params["wk"]).reshape(S, n_heads, dk).transpose(1, 0, 2)
    v = (x @ params["wv"]).reshape(S, n_heads, dk).transpose(1, 0, 2)

    scores = jnp.einsum("hqd,hkd->hqk", q, k) / math.sqrt(dk)
    attn = jax.nn.softmax(scores, axis=-1)
    ctx = jnp.einsum("hqk,hkd->hqd", attn, v)                    # [H, S, dk]
    ctx = jnp.transpose(ctx, (0, 2, 1)).reshape(-1, n_heads * dk)  # buggy recombine
    att_out = ctx @ params["wfc"]

    def ln(y, g, b):
        mu = y.mean(-1, keepdims=True)
        var = ((y - mu) ** 2).mean(-1, keepdims=True)
        return (y - mu) / jnp.sqrt(var + 1e-5) * g + b

    x1 = ln(att_out + x, params["ln1_g"], params["ln1_b"])
    l1 = x1 @ params["w1"] + params["b1"]
    return ln(l1 + x1, params["ln2_g"], params["ln2_b"])


# ---------------------------------------------------------------------------
# Main
# ---------------------------------------------------------------------------

if __name__ == "__main__":
    SEQ = 32        # number of rows of X (the view(-1, ...) dimension)
    DIM = 128       # input_dim
    HEADS = 4       # n_heads  -> d_k = d_v = 32

    key = jax.random.PRNGKey(0)
    ks = jax.random.split(key, 12)

    params = {
        "wq":    jax.random.normal(ks[0], (DIM, DIM), jnp.float32) * 0.05,
        "wk":    jax.random.normal(ks[1], (DIM, DIM), jnp.float32) * 0.05,
        "wv":    jax.random.normal(ks[2], (DIM, DIM), jnp.float32) * 0.05,
        "wfc":   jax.random.normal(ks[3], (DIM, DIM), jnp.float32) * 0.05,
        "ln1_g": 1.0 + 0.1 * jax.random.normal(ks[4], (1, DIM), jnp.float32),
        "ln1_b": 0.1 * jax.random.normal(ks[5], (1, DIM), jnp.float32),
        "w1":    jax.random.normal(ks[6], (DIM, DIM), jnp.float32) * 0.05,
        "b1":    0.1 * jax.random.normal(ks[7], (1, DIM), jnp.float32),
        "ln2_g": 1.0 + 0.1 * jax.random.normal(ks[8], (1, DIM), jnp.float32),
        "ln2_b": 0.1 * jax.random.normal(ks[9], (1, DIM), jnp.float32),
    }
    x = jax.random.normal(ks[10], (SEQ, DIM), jnp.float32)

    out = encoder_layer_forward(x, params, HEADS)
    out = jax.block_until_ready(out)

    ref = encoder_layer_ref(x, params, HEADS)
    assert out.shape == (SEQ, DIM)
    assert jnp.allclose(out, ref, rtol=1e-3, atol=1e-3), "mismatch vs reference"

    print("KERNEL_OK")
</pallas_src>

<mosaic_0001>
module attributes {stable_mosaic.version = 11 : i64} {
  func.func @kernel(%arg0: memref<32x128xf32, #tpu.memory_space<vmem>>, %arg1: memref<128x128xf32, #tpu.memory_space<vmem>>, %arg2: memref<128x128xf32, #tpu.memory_space<vmem>>, %arg3: memref<128x128xf32, #tpu.memory_space<vmem>>, %arg4: memref<128x128xf32, #tpu.memory_space<vmem>>, %arg5: memref<1x128xf32, #tpu.memory_space<vmem>>, %arg6: memref<1x128xf32, #tpu.memory_space<vmem>>, %arg7: memref<128x128xf32, #tpu.memory_space<vmem>>, %arg8: memref<1x128xf32, #tpu.memory_space<vmem>>, %arg9: memref<1x128xf32, #tpu.memory_space<vmem>>, %arg10: memref<1x128xf32, #tpu.memory_space<vmem>>, %arg11: memref<32x128xf32, #tpu.memory_space<vmem>>, %arg12: memref<32x128xf32, #tpu.memory_space<vmem>>) attributes {dimension_semantics = [], scalar_prefetch = 0 : i64, scratch_operands = 1 : i64, tpu.core_type = #tpu.core_type<tc>} {
    %c0 = arith.constant 0 : index
    %c0_0 = arith.constant 0 : index
    %0 = vector.load %arg0[%c0, %c0_0] : memref<32x128xf32, #tpu.memory_space<vmem>>, vector<32x128xf32>
    %c0_1 = arith.constant 0 : index
    %c0_2 = arith.constant 0 : index
    %1 = vector.load %arg1[%c0_1, %c0_2] : memref<128x128xf32, #tpu.memory_space<vmem>>, vector<128x128xf32>
    %cst = arith.constant dense<0.000000e+00> : vector<32x128xf32>
    %2 = tpu.matmul %0, %1, %cst {dimension_numbers = #tpu.dot_dimension_numbers<[1], [0], [0], [1], [0, 0, 1, 1], [], []>} : vector<32x128xf32>, vector<128x128xf32>, vector<32x128xf32> -> vector<32x128xf32>
    %c0_3 = arith.constant 0 : index
    %c0_4 = arith.constant 0 : index
    %3 = vector.load %arg2[%c0_3, %c0_4] : memref<128x128xf32, #tpu.memory_space<vmem>>, vector<128x128xf32>
    %cst_5 = arith.constant dense<0.000000e+00> : vector<32x128xf32>
    %4 = tpu.matmul %0, %3, %cst_5 {dimension_numbers = #tpu.dot_dimension_numbers<[1], [0], [0], [1], [0, 0, 1, 1], [], []>} : vector<32x128xf32>, vector<128x128xf32>, vector<32x128xf32> -> vector<32x128xf32>
    %c0_6 = arith.constant 0 : index
    %c0_7 = arith.constant 0 : index
    %5 = vector.load %arg3[%c0_6, %c0_7] : memref<128x128xf32, #tpu.memory_space<vmem>>, vector<128x128xf32>
    %cst_8 = arith.constant dense<0.000000e+00> : vector<32x128xf32>
    %6 = tpu.matmul %0, %5, %cst_8 {dimension_numbers = #tpu.dot_dimension_numbers<[1], [0], [0], [1], [0, 0, 1, 1], [], []>} : vector<32x128xf32>, vector<128x128xf32>, vector<32x128xf32> -> vector<32x128xf32>
    %7 = vector.extract_strided_slice %2 {offsets = [0, 0], sizes = [32, 32], strides = [1, 1]} : vector<32x128xf32> to vector<32x32xf32>
    %8 = vector.extract_strided_slice %4 {offsets = [0, 0], sizes = [32, 32], strides = [1, 1]} : vector<32x128xf32> to vector<32x32xf32>
    %9 = vector.extract_strided_slice %6 {offsets = [0, 0], sizes = [32, 32], strides = [1, 1]} : vector<32x128xf32> to vector<32x32xf32>
    %10 = tpu.transpose %8, [1, 0] : vector<32x32xf32> -> vector<32x32xf32>
    %cst_9 = arith.constant dense<0.000000e+00> : vector<32x32xf32>
    %11 = tpu.matmul %7, %10, %cst_9 {dimension_numbers = #tpu.dot_dimension_numbers<[1], [0], [0], [1], [0, 0, 1, 1], [], []>} : vector<32x32xf32>, vector<32x32xf32>, vector<32x32xf32> -> vector<32x32xf32>
    %cst_10 = arith.constant 0.176776692 : f32
    %12 = vector.broadcast %cst_10 : f32 to vector<32x32xf32>
    %13 = arith.mulf %11, %12 : vector<32x32xf32>
    %cst_11 = arith.constant dense<0xFF800000> : vector<32xf32>
    %14 = vector.multi_reduction <maximumf>, %13, %cst_11 [1] : vector<32x32xf32> to vector<32xf32>
    %15 = vector.shape_cast %14 : vector<32xf32> to vector<32x1xf32>
    %16 = vector.broadcast %15 : vector<32x1xf32> to vector<32x32xf32>
    %17 = arith.subf %13, %16 : vector<32x32xf32>
    %18 = math.exp %17 : vector<32x32xf32>
    %cst_12 = arith.constant dense<0.000000e+00> : vector<32xf32>
    %19 = vector.multi_reduction <add>, %18, %cst_12 [1] : vector<32x32xf32> to vector<32xf32>
    %20 = vector.shape_cast %19 : vector<32xf32> to vector<32x1xf32>
    %21 = vector.broadcast %20 : vector<32x1xf32> to vector<32x32xf32>
    %22 = arith.divf %18, %21 : vector<32x32xf32>
    %cst_13 = arith.constant dense<0.000000e+00> : vector<32x32xf32>
    %23 = tpu.matmul %22, %9, %cst_13 {dimension_numbers = #tpu.dot_dimension_numbers<[1], [0], [0], [1], [0, 0, 1, 1], [], []>} : vector<32x32xf32>, vector<32x32xf32>, vector<32x32xf32> -> vector<32x32xf32>
    %24 = tpu.transpose %23, [1, 0] : vector<32x32xf32> -> vector<32x32xf32>
    %25 = vector.extract_strided_slice %24 {offsets = [0, 0], sizes = [8, 32], strides = [1, 1]} : vector<32x32xf32> to vector<8x32xf32>
    %c0_14 = arith.constant 0 : index
    %c0_15 = arith.constant 0 : index
    %26 = vector.load %arg12[%c0_14, %c0_15] : memref<32x128xf32, #tpu.memory_space<vmem>>, vector<8x32xf32>
    tpu.vector_store %arg12[%c0_14, %c0_15], %25 {strides = array<i32>} : memref<32x128xf32, #tpu.memory_space<vmem>>, vector<8x32xf32>,
    %27 = vector.extract_strided_slice %24 {offsets = [8, 0], sizes = [8, 32], strides = [1, 1]} : vector<32x32xf32> to vector<8x32xf32>
    %c0_16 = arith.constant 0 : index
    %c32 = arith.constant 32 : index
    %28 = vector.load %arg12[%c0_16, %c32] : memref<32x128xf32, #tpu.memory_space<vmem>>, vector<8x32xf32>
    tpu.vector_store %arg12[%c0_16, %c32], %27 {strides = array<i32>} : memref<32x128xf32, #tpu.memory_space<vmem>>, vector<8x32xf32>,
    %29 = vector.extract_strided_slice %24 {offsets = [16, 0], sizes = [8, 32], strides = [1, 1]} : vector<32x32xf32> to vector<8x32xf32>
    %c0_17 = arith.constant 0 : index
    %c64 = arith.constant 64 : index
    %30 = vector.load %arg12[%c0_17, %c64] : memref<32x128xf32, #tpu.memory_space<vmem>>, vector<8x32xf32>
    tpu.vector_store %arg12[%c0_17, %c64], %29 {strides = array<i32>} : memref<32x128xf32, #tpu.memory_space<vmem>>, vector<8x32xf32>,
    %31 = vector.extract_strided_slice %24 {offsets = [24, 0], sizes = [8, 32], strides = [1, 1]} : vector<32x32xf32> to vector<8x32xf32>
    %c0_18 = arith.constant 0 : index
    %c96 = arith.constant 96 : index
    %32 = vector.load %arg12[%c0_18, %c96] : memref<32x128xf32, #tpu.memory_space<vmem>>, vector<8x32xf32>
    tpu.vector_store %arg12[%c0_18, %c96], %31 {strides = array<i32>} : memref<32x128xf32, #tpu.memory_space<vmem>>, vector<8x32xf32>,
    %33 = vector.extract_strided_slice %2 {offsets = [0, 32], sizes = [32, 32], strides = [1, 1]} : vector<32x128xf32> to vector<32x32xf32>
    %34 = vector.extract_strided_slice %4 {offsets = [0, 32], sizes = [32, 32], strides = [1, 1]} : vector<32x128xf32> to vector<32x32xf32>
    %35 = vector.extract_strided_slice %6 {offsets = [0, 32], sizes = [32, 32], strides = [1, 1]} : vector<32x128xf32> to vector<32x32xf32>
    %36 = tpu.transpose %34, [1, 0] : vector<32x32xf32> -> vector<32x32xf32>
    %cst_19 = arith.constant dense<0.000000e+00> : vector<32x32xf32>
    %37 = tpu.matmul %33, %36, %cst_19 {dimension_numbers = #tpu.dot_dimension_numbers<[1], [0], [0], [1], [0, 0, 1, 1], [], []>} : vector<32x32xf32>, vector<32x32xf32>, vector<32x32xf32> -> vector<32x32xf32>
    %cst_20 = arith.constant 0.176776692 : f32
    %38 = vector.broadcast %cst_20 : f32 to vector<32x32xf32>
    %39 = arith.mulf %37, %38 : vector<32x32xf32>
    %cst_21 = arith.constant dense<0xFF800000> : vector<32xf32>
    %40 = vector.multi_reduction <maximumf>, %39, %cst_21 [1] : vector<32x32xf32> to vector<32xf32>
    %41 = vector.shape_cast %40 : vector<32xf32> to vector<32x1xf32>
    %42 = vector.broadcast %41 : vector<32x1xf32> to vector<32x32xf32>
    %43 = arith.subf %39, %42 : vector<32x32xf32>
    %44 = math.exp %43 : vector<32x32xf32>
    %cst_22 = arith.constant dense<0.000000e+00> : vector<32xf32>
    %45 = vector.multi_reduction <add>, %44, %cst_22 [1] : vector<32x32xf32> to vector<32xf32>
    %46 = vector.shape_cast %45 : vector<32xf32> to vector<32x1xf32>
    %47 = vector.broadcast %46 : vector<32x1xf32> to vector<32x32xf32>
    %48 = arith.divf %44, %47 : vector<32x32xf32>
    %cst_23 = arith.constant dense<0.000000e+00> : vector<32x32xf32>
    %49 = tpu.matmul %48, %35, %cst_23 {dimension_numbers = #tpu.dot_dimension_numbers<[1], [0], [0], [1], [0, 0, 1, 1], [], []>} : vector<32x32xf32>, vector<32x32xf32>, vector<32x32xf32> -> vector<32x32xf32>
    %50 = tpu.transpose %49, [1, 0] : vector<32x32xf32> -> vector<32x32xf32>
    %51 = vector.extract_strided_slice %50 {offsets = [0, 0], sizes = [8, 32], strides = [1, 1]} : vector<32x32xf32> to vector<8x32xf32>
    %c8 = arith.constant 8 : index
    %c0_24 = arith.constant 0 : index
    %52 = vector.load %arg12[%c8, %c0_24] : memref<32x128xf32, #tpu.memory_space<vmem>>, vector<8x32xf32>
    tpu.vector_store %arg12[%c8, %c0_24], %51 {strides = array<i32>} : memref<32x128xf32, #tpu.memory_space<vmem>>, vector<8x32xf32>,
    %53 = vector.extract_strided_slice %50 {offsets = [8, 0], sizes = [8, 32], strides = [1, 1]} : vector<32x32xf32> to vector<8x32xf32>
    %c8_25 = arith.constant 8 : index
    %c32_26 = arith.constant 32 : index
    %54 = vector.load %arg12[%c8_25, %c32_26] : memref<32x128xf32, #tpu.memory_space<vmem>>, vector<8x32xf32>
    tpu.vector_store %arg12[%c8_25, %c32_26], %53 {strides = array<i32>} : memref<32x128xf32, #tpu.memory_space<vmem>>, vector<8x32xf32>,
    %55 = vector.extract_strided_slice %50 {offsets = [16, 0], sizes = [8, 32], strides = [1, 1]} : vector<32x32xf32> to vector<8x32xf32>
    %c8_27 = arith.constant 8 : index
    %c64_28 = arith.constant 64 : index
    %56 = vector.load %arg12[%c8_27, %c64_28] : memref<32x128xf32, #tpu.memory_space<vmem>>, vector<8x32xf32>
    tpu.vector_store %arg12[%c8_27, %c64_28], %55 {strides = array<i32>} : memref<32x128xf32, #tpu.memory_space<vmem>>, vector<8x32xf32>,
    %57 = vector.extract_strided_slice %50 {offsets = [24, 0], sizes = [8, 32], strides = [1, 1]} : vector<32x32xf32> to vector<8x32xf32>
    %c8_29 = arith.constant 8 : index
    %c96_30 = arith.constant 96 : index
    %58 = vector.load %arg12[%c8_29, %c96_30] : memref<32x128xf32, #tpu.memory_space<vmem>>, vector<8x32xf32>
    tpu.vector_store %arg12[%c8_29, %c96_30], %57 {strides = array<i32>} : memref<32x128xf32, #tpu.memory_space<vmem>>, vector<8x32xf32>,
    %59 = vector.extract_strided_slice %2 {offsets = [0, 64], sizes = [32, 32], strides = [1, 1]} : vector<32x128xf32> to vector<32x32xf32>
    %60 = vector.extract_strided_slice %4 {offsets = [0, 64], sizes = [32, 32], strides = [1, 1]} : vector<32x128xf32> to vector<32x32xf32>
    %61 = vector.extract_strided_slice %6 {offsets = [0, 64], sizes = [32, 32], strides = [1, 1]} : vector<32x128xf32> to vector<32x32xf32>
    %62 = tpu.transpose %60, [1, 0] : vector<32x32xf32> -> vector<32x32xf32>
    %cst_31 = arith.constant dense<0.000000e+00> : vector<32x32xf32>
    %63 = tpu.matmul %59, %62, %cst_31 {dimension_numbers = #tpu.dot_dimension_numbers<[1], [0], [0], [1], [0, 0, 1, 1], [], []>} : vector<32x32xf32>, vector<32x32xf32>, vector<32x32xf32> -> vector<32x32xf32>
    %cst_32 = arith.constant 0.176776692 : f32
    %64 = vector.broadcast %cst_32 : f32 to vector<32x32xf32>
    %65 = arith.mulf %63, %64 : vector<32x32xf32>
    %cst_33 = arith.constant dense<0xFF800000> : vector<32xf32>
    %66 = vector.multi_reduction <maximumf>, %65, %cst_33 [1] : vector<32x32xf32> to vector<32xf32>
    %67 = vector.shape_cast %66 : vector<32xf32> to vector<32x1xf32>
    %68 = vector.broadcast %67 : vector<32x1xf32> to vector<32x32xf32>
    %69 = arith.subf %65, %68 : vector<32x32xf32>
    %70 = math.exp %69 : vector<32x32xf32>
    %cst_34 = arith.constant dense<0.000000e+00> : vector<32xf32>
    %71 = vector.multi_reduction <add>, %70, %cst_34 [1] : vector<32x32xf32> to vector<32xf32>
    %72 = vector.shape_cast %71 : vector<32xf32> to vector<32x1xf32>
    %73 = vector.broadcast %72 : vector<32x1xf32> to vector<32x32xf32>
    %74 = arith.divf %70, %73 : vector<32x32xf32>
    %cst_35 = arith.constant dense<0.000000e+00> : vector<32x32xf32>
    %75 = tpu.matmul %74, %61, %cst_35 {dimension_numbers = #tpu.dot_dimension_numbers<[1], [0], [0], [1], [0, 0, 1, 1], [], []>} : vector<32x32xf32>, vector<32x32xf32>, vector<32x32xf32> -> vector<32x32xf32>
    %76 = tpu.transpose %75, [1, 0] : vector<32x32xf32> -> vector<32x32xf32>
    %77 = vector.extract_strided_slice %76 {offsets = [0, 0], sizes = [8, 32], strides = [1, 1]} : vector<32x32xf32> to vector<8x32xf32>
    %c16 = arith.constant 16 : index
    %c0_36 = arith.constant 0 : index
    %78 = vector.load %arg12[%c16, %c0_36] : memref<32x128xf32, #tpu.memory_space<vmem>>, vector<8x32xf32>
    tpu.vector_store %arg12[%c16, %c0_36], %77 {strides = array<i32>} : memref<32x128xf32, #tpu.memory_space<vmem>>, vector<8x32xf32>,
    %79 = vector.extract_strided_slice %76 {offsets = [8, 0], sizes = [8, 32], strides = [1, 1]} : vector<32x32xf32> to vector<8x32xf32>
    %c16_37 = arith.constant 16 : index
    %c32_38 = arith.constant 32 : index
    %80 = vector.load %arg12[%c16_37, %c32_38] : memref<32x128xf32, #tpu.memory_space<vmem>>, vector<8x32xf32>
    tpu.vector_store %arg12[%c16_37, %c32_38], %79 {strides = array<i32>} : memref<32x128xf32, #tpu.memory_space<vmem>>, vector<8x32xf32>,
    %81 = vector.extract_strided_slice %76 {offsets = [16, 0], sizes = [8, 32], strides = [1, 1]} : vector<32x32xf32> to vector<8x32xf32>
    %c16_39 = arith.constant 16 : index
    %c64_40 = arith.constant 64 : index
    %82 = vector.load %arg12[%c16_39, %c64_40] : memref<32x128xf32, #tpu.memory_space<vmem>>, vector<8x32xf32>
    tpu.vector_store %arg12[%c16_39, %c64_40], %81 {strides = array<i32>} : memref<32x128xf32, #tpu.memory_space<vmem>>, vector<8x32xf32>,
    %83 = vector.extract_strided_slice %76 {offsets = [24, 0], sizes = [8, 32], strides = [1, 1]} : vector<32x32xf32> to vector<8x32xf32>
    %c16_41 = arith.constant 16 : index
    %c96_42 = arith.constant 96 : index
    %84 = vector.load %arg12[%c16_41, %c96_42] : memref<32x128xf32, #tpu.memory_space<vmem>>, vector<8x32xf32>
    tpu.vector_store %arg12[%c16_41, %c96_42], %83 {strides = array<i32>} : memref<32x128xf32, #tpu.memory_space<vmem>>, vector<8x32xf32>,
    %85 = vector.extract_strided_slice %2 {offsets = [0, 96], sizes = [32, 32], strides = [1, 1]} : vector<32x128xf32> to vector<32x32xf32>
    %86 = vector.extract_strided_slice %4 {offsets = [0, 96], sizes = [32, 32], strides = [1, 1]} : vector<32x128xf32> to vector<32x32xf32>
    %87 = vector.extract_strided_slice %6 {offsets = [0, 96], sizes = [32, 32], strides = [1, 1]} : vector<32x128xf32> to vector<32x32xf32>
    %88 = tpu.transpose %86, [1, 0] : vector<32x32xf32> -> vector<32x32xf32>
    %cst_43 = arith.constant dense<0.000000e+00> : vector<32x32xf32>
    %89 = tpu.matmul %85, %88, %cst_43 {dimension_numbers = #tpu.dot_dimension_numbers<[1], [0], [0], [1], [0, 0, 1, 1], [], []>} : vector<32x32xf32>, vector<32x32xf32>, vector<32x32xf32> -> vector<32x32xf32>
    %cst_44 = arith.constant 0.176776692 : f32
    %90 = vector.broadcast %cst_44 : f32 to vector<32x32xf32>
    %91 = arith.mulf %89, %90 : vector<32x32xf32>
    %cst_45 = arith.constant dense<0xFF800000> : vector<32xf32>
    %92 = vector.multi_reduction <maximumf>, %91, %cst_45 [1] : vector<32x32xf32> to vector<32xf32>
    %93 = vector.shape_cast %92 : vector<32xf32> to vector<32x1xf32>
    %94 = vector.broadcast %93 : vector<32x1xf32> to vector<32x32xf32>
    %95 = arith.subf %91, %94 : vector<32x32xf32>
    %96 = math.exp %95 : vector<32x32xf32>
    %cst_46 = arith.constant dense<0.000000e+00> : vector<32xf32>
    %97 = vector.multi_reduction <add>, %96, %cst_46 [1] : vector<32x32xf32> to vector<32xf32>
    %98 = vector.shape_cast %97 : vector<32xf32> to vector<32x1xf32>
    %99 = vector.broadcast %98 : vector<32x1xf32> to vector<32x32xf32>
    %100 = arith.divf %96, %99 : vector<32x32xf32>
    %cst_47 = arith.constant dense<0.000000e+00> : vector<32x32xf32>
    %101 = tpu.matmul %100, %87, %cst_47 {dimension_numbers = #tpu.dot_dimension_numbers<[1], [0], [0], [1], [0, 0, 1, 1], [], []>} : vector<32x32xf32>, vector<32x32xf32>, vector<32x32xf32> -> vector<32x32xf32>
    %102 = tpu.transpose %101, [1, 0] : vector<32x32xf32> -> vector<32x32xf32>
    %103 = vector.extract_strided_slice %102 {offsets = [0, 0], sizes = [8, 32], strides = [1, 1]} : vector<32x32xf32> to vector<8x32xf32>
    %c24 = arith.constant 24 : index
    %c0_48 = arith.constant 0 : index
    %104 = vector.load %arg12[%c24, %c0_48] : memref<32x128xf32, #tpu.memory_space<vmem>>, vector<8x32xf32>
    tpu.vector_store %arg12[%c24, %c0_48], %103 {strides = array<i32>} : memref<32x128xf32, #tpu.memory_space<vmem>>, vector<8x32xf32>,
    %105 = vector.extract_strided_slice %102 {offsets = [8, 0], sizes = [8, 32], strides = [1, 1]} : vector<32x32xf32> to vector<8x32xf32>
    %c24_49 = arith.constant 24 : index
    %c32_50 = arith.constant 32 : index
    %106 = vector.load %arg12[%c24_49, %c32_50] : memref<32x128xf32, #tpu.memory_space<vmem>>, vector<8x32xf32>
    tpu.vector_store %arg12[%c24_49, %c32_50], %105 {strides = array<i32>} : memref<32x128xf32, #tpu.memory_space<vmem>>, vector<8x32xf32>,
    %107 = vector.extract_strided_slice %102 {offsets = [16, 0], sizes = [8, 32], strides = [1, 1]} : vector<32x32xf32> to vector<8x32xf32>
    %c24_51 = arith.constant 24 : index
    %c64_52 = arith.constant 64 : index
    %108 = vector.load %arg12[%c24_51, %c64_52] : memref<32x128xf32, #tpu.memory_space<vmem>>, vector<8x32xf32>
    tpu.vector_store %arg12[%c24_51, %c64_52], %107 {strides = array<i32>} : memref<32x128xf32, #tpu.memory_space<vmem>>, vector<8x32xf32>,
    %109 = vector.extract_strided_slice %102 {offsets = [24, 0], sizes = [8, 32], strides = [1, 1]} : vector<32x32xf32> to vector<8x32xf32>
    %c24_53 = arith.constant 24 : index
    %c96_54 = arith.constant 96 : index
    %110 = vector.load %arg12[%c24_53, %c96_54] : memref<32x128xf32, #tpu.memory_space<vmem>>, vector<8x32xf32>
    tpu.vector_store %arg12[%c24_53, %c96_54], %109 {strides = array<i32>} : memref<32x128xf32, #tpu.memory_space<vmem>>, vector<8x32xf32>,
    %c0_55 = arith.constant 0 : index
    %c0_56 = arith.constant 0 : index
    %111 = vector.load %arg12[%c0_55, %c0_56] : memref<32x128xf32, #tpu.memory_space<vmem>>, vector<32x128xf32>
    %c0_57 = arith.constant 0 : index
    %c0_58 = arith.constant 0 : index
    %112 = vector.load %arg4[%c0_57, %c0_58] : memref<128x128xf32, #tpu.memory_space<vmem>>, vector<128x128xf32>
    %cst_59 = arith.constant dense<0.000000e+00> : vector<32x128xf32>
    %113 = tpu.matmul %111, %112, %cst_59 {dimension_numbers = #tpu.dot_dimension_numbers<[1], [0], [0], [1], [0, 0, 1, 1], [], []>} : vector<32x128xf32>, vector<128x128xf32>, vector<32x128xf32> -> vector<32x128xf32>
    %114 = arith.addf %113, %0 : vector<32x128xf32>
    %c0_60 = arith.constant 0 : index
    %c0_61 = arith.constant 0 : index
    %115 = vector.load %arg5[%c0_60, %c0_61] : memref<1x128xf32, #tpu.memory_space<vmem>>, vector<1x128xf32>
    %c0_62 = arith.constant 0 : index
    %c0_63 = arith.constant 0 : index
    %116 = vector.load %arg6[%c0_62, %c0_63] : memref<1x128xf32, #tpu.memory_space<vmem>>, vector<1x128xf32>
    %cst_64 = arith.constant dense<0.000000e+00> : vector<32xf32>
    %117 = vector.multi_reduction <add>, %114, %cst_64 [1] : vector<32x128xf32> to vector<32xf32>
    %118 = vector.shape_cast %117 : vector<32xf32> to vector<32x1xf32>
    %cst_65 = arith.constant 1.280000e+02 : f32
    %119 = vector.broadcast %cst_65 : f32 to vector<32x1xf32>
    %120 = arith.divf %118, %119 : vector<32x1xf32>
    %121 = vector.broadcast %120 : vector<32x1xf32> to vector<32x128xf32>
    %122 = arith.subf %114, %121 : vector<32x128xf32>
    %123 = arith.mulf %122, %122 : vector<32x128xf32>
    %cst_66 = arith.constant dense<0.000000e+00> : vector<32xf32>
    %124 = vector.multi_reduction <add>, %123, %cst_66 [1] : vector<32x128xf32> to vector<32xf32>
    %125 = vector.shape_cast %124 : vector<32xf32> to vector<32x1xf32>
    %cst_67 = arith.constant 1.280000e+02 : f32
    %126 = vector.broadcast %cst_67 : f32 to vector<32x1xf32>
    %127 = arith.divf %125, %126 : vector<32x1xf32>
    %cst_68 = arith.constant 9.99999974E-6 : f32
    %128 = vector.broadcast %cst_68 : f32 to vector<32x1xf32>
    %129 = arith.addf %127, %128 : vector<32x1xf32>
    %130 = math.rsqrt %129 : vector<32x1xf32>
    %131 = vector.broadcast %130 : vector<32x1xf32> to vector<32x128xf32>
    %132 = arith.mulf %122, %131 : vector<32x128xf32>
    %133 = vector.broadcast %115 : vector<1x128xf32> to vector<32x128xf32>
    %134 = arith.mulf %132, %133 : vector<32x128xf32>
    %135 = vector.broadcast %116 : vector<1x128xf32> to vector<32x128xf32>
    %136 = arith.addf %134, %135 : vector<32x128xf32>
    %c0_69 = arith.constant 0 : index
    %c0_70 = arith.constant 0 : index
    %137 = vector.load %arg7[%c0_69, %c0_70] : memref<128x128xf32, #tpu.memory_space<vmem>>, vector<128x128xf32>
    %cst_71 = arith.constant dense<0.000000e+00> : vector<32x128xf32>
    %138 = tpu.matmul %136, %137, %cst_71 {dimension_numbers = #tpu.dot_dimension_numbers<[1], [0], [0], [1], [0, 0, 1, 1], [], []>} : vector<32x128xf32>, vector<128x128xf32>, vector<32x128xf32> -> vector<32x128xf32>
    %c0_72 = arith.constant 0 : index
    %c0_73 = arith.constant 0 : index
    %139 = vector.load %arg8[%c0_72, %c0_73] : memref<1x128xf32, #tpu.memory_space<vmem>>, vector<1x128xf32>
    %140 = vector.broadcast %139 : vector<1x128xf32> to vector<32x128xf32>
    %141 = arith.addf %138, %140 : vector<32x128xf32>
    %142 = arith.addf %141, %136 : vector<32x128xf32>
    %c0_74 = arith.constant 0 : index
    %c0_75 = arith.constant 0 : index
    %143 = vector.load %arg9[%c0_74, %c0_75] : memref<1x128xf32, #tpu.memory_space<vmem>>, vector<1x128xf32>
    %c0_76 = arith.constant 0 : index
    %c0_77 = arith.constant 0 : index
    %144 = vector.load %arg10[%c0_76, %c0_77] : memref<1x128xf32, #tpu.memory_space<vmem>>, vector<1x128xf32>
    %cst_78 = arith.constant dense<0.000000e+00> : vector<32xf32>
    %145 = vector.multi_reduction <add>, %142, %cst_78 [1] : vector<32x128xf32> to vector<32xf32>
    %146 = vector.shape_cast %145 : vector<32xf32> to vector<32x1xf32>
    %cst_79 = arith.constant 1.280000e+02 : f32
    %147 = vector.broadcast %cst_79 : f32 to vector<32x1xf32>
    %148 = arith.divf %146, %147 : vector<32x1xf32>
    %149 = vector.broadcast %148 : vector<32x1xf32> to vector<32x128xf32>
    %150 = arith.subf %142, %149 : vector<32x128xf32>
    %151 = arith.mulf %150, %150 : vector<32x128xf32>
    %cst_80 = arith.constant dense<0.000000e+00> : vector<32xf32>
    %152 = vector.multi_reduction <add>, %151, %cst_80 [1] : vector<32x128xf32> to vector<32xf32>
    %153 = vector.shape_cast %152 : vector<32xf32> to vector<32x1xf32>
    %cst_81 = arith.constant 1.280000e+02 : f32
    %154 = vector.broadcast %cst_81 : f32 to vector<32x1xf32>
    %155 = arith.divf %153, %154 : vector<32x1xf32>
    %cst_82 = arith.constant 9.99999974E-6 : f32
    %156 = vector.broadcast %cst_82 : f32 to vector<32x1xf32>
    %157 = arith.addf %155, %156 : vector<32x1xf32>
    %158 = math.rsqrt %157 : vector<32x1xf32>
    %159 = vector.broadcast %158 : vector<32x1xf32> to vector<32x128xf32>
    %160 = arith.mulf %150, %159 : vector<32x128xf32>
    %161 = vector.broadcast %143 : vector<1x128xf32> to vector<32x128xf32>
    %162 = arith.mulf %160, %161 : vector<32x128xf32>
    %163 = vector.broadcast %144 : vector<1x128xf32> to vector<32x128xf32>
    %164 = arith.addf %162, %163 : vector<32x128xf32>
    %c0_83 = arith.constant 0 : index
    %c0_84 = arith.constant 0 : index
    %165 = vector.load %arg11[%c0_83, %c0_84] : memref<32x128xf32, #tpu.memory_space<vmem>>, vector<32x128xf32>
    tpu.vector_store %arg11[%c0_83, %c0_84], %164 {strides = array<i32>} : memref<32x128xf32, #tpu.memory_space<vmem>>, vector<32x128xf32>,
    return
  }
}

</mosaic_0001>

<bundles_post_ra>
// kernel: tpu_custom_call.1
= control target key start
LH: loop header
LB: loop body
LE: loop exit
PB: predicated region body
PF: predicated region fallthrough
CT: control target
= control target key end

     0   :  { %16 = vsyncpa [#allocation4], 0  ;;  %s3610_s0 = inlined_call_operand.hbm [shape: f32[32,128], index: 0, kind: input, shape index: {}]   ;;  %s3611_s1 = inlined_call_operand.hbm [shape: f32[128,128], index: 1, kind: input, shape index: {}]   ;;  %s3612_s2 = inlined_call_operand.hbm [shape: f32[128,128], index: 2, kind: input, shape index: {}]   ;;  %s3613_s3 = inlined_call_operand.hbm [shape: f32[128,128], index: 3, kind: input, shape index: {}]   ;;  %s3614_s4 = inlined_call_operand.hbm [shape: f32[128,128], index: 4, kind: input, shape index: {}]   ;;  %s3615_s5 = inlined_call_operand.vmem [shape: f32[1,128], index: 5, kind: input, shape index: {}]   ;;  %s3616_s6 = inlined_call_operand.vmem [shape: f32[1,128], index: 6, kind: input, shape index: {}]   ;;  %s3617_s7 = inlined_call_operand.hbm [shape: f32[128,128], index: 7, kind: input, shape index: {}]   ;;  %s3618_s8 = inlined_call_operand.vmem [shape: f32[1,128], index: 8, kind: input, shape index: {}]   ;;  %s3619_s9 = inlined_call_operand.vmem [shape: f32[1,128], index: 9, kind: input, shape index: {}]   ;;  %s3620_s10 = inlined_call_operand.vmem [shape: f32[1,128], index: 10, kind: input, shape index: {}]   ;;  %s3621_s11 = inlined_call_operand.hbm [shape: f32[32,128], index: 11, kind: output, shape index: {}]  }
   0x1   :  { %17 = vsyncpa [#allocation7], 0 }
   0x2   :  { %18 = vsyncpa [#allocation10], 0 }
   0x3   :  { %19 = vsyncpa [#allocation13], 0 }
   0x4   :  { %20 = vsyncpa [#allocation5], 0  ;;  %s3156_s17 = smov [#allocation6]   ;;  %s3157_s19 = smov [#allocation9]  }
   0x5   :  { %s38_s18 = sshll.u32 %s3156_s17, 4  ;;  %s62_s20 = sshll.u32 %s3157_s19, 4  ;;  %s39_s18 = int_to_ptr.vmem [resolvable:$true] %s38_s18  ;;  %s3228_s20 = int_to_ptr.vmem [resolvable:$true] %s62_s20 }
   0x6   :  { %s2992_s23 = scalar_lea.hbm %s3611_s1, 2048 }
   0x7   :  { %p2993_p0 = scmp.ne.s32.totalorder %s3611_s1, %s2992_s23  ;;  %p2996_p1 = scmp.lt.u32.totalorder %s2992_s23, %s3611_s1 }
   0x9   :  { %p2998_p2 = pnand %p2996_p1, %p2993_p0 }
   0xb   :  { %3001 = shalt.err (!%p2998_p2)
}
   0xc   :  { %s3002_s28 = scalar_lea.vmem %s39_s18, 2048  ;;  %p3007_p4 = scmp.lt.s32.totalorder %s39_s18, %s39_s18 }
   0xd   :  { %p3003_p3 = scmp.ne.s32.totalorder %s39_s18, %s3002_s28  ;;  %p3008_p5 = scmp.lt.s32.totalorder %s3002_s28, %s3002_s28 }
   0xf   :  { %p3009_p6 = por %p3008_p5, %p3007_p4 }
  0x11   :  { %p3010_p7 = pnand %p3009_p6, %p3003_p3 }
  0x13   :  { %3013 = shalt.err (!%p3010_p7)
}
  0x14   :  { %s3158_s29 = smov 128   ;;  %s3159_s30 = smov 8  }
  0x15   :  { %44 = dma.hbm_to_vmem [thread:$0]  %s3611_s1, 2048, %s39_s18, [#allocation7], %s3158_s29, %s3158_s29, %s3159_s30  }
  0x16   :  { %s3014_s16 = scalar_lea.hbm %s3613_s3, 2048 }
  0x17   :  { %p3015_p8 = scmp.ne.s32.totalorder %s3613_s3, %s3014_s16  ;;  %p3018_p9 = scmp.lt.u32.totalorder %s3014_s16, %s3613_s3 }
  0x19   :  { %p3020_p10 = pnand %p3018_p9, %p3015_p8 }
  0x1b   :  { %3023 = shalt.err (!%p3020_p10)
}
  0x1c   :  { %s3024_s23 = scalar_lea.vmem %s3228_s20, 2048  ;;  %p3029_p12 = scmp.lt.s32.totalorder %s3228_s20, %s3228_s20 }
  0x1d   :  { %p3025_p11 = scmp.ne.s32.totalorder %s3228_s20, %s3024_s23  ;;  %p3030_p13 = scmp.lt.s32.totalorder %s3024_s23, %s3024_s23 }
  0x1f   :  { %p3031_p0 = por %p3030_p13, %p3029_p12 }
  0x21   :  { %p3032_p1 = pnand %p3031_p0, %p3025_p11 }
  0x23   :  { %3035 = shalt.err (!%p3032_p1)
}
  0x24   :  { %68 = dma.hbm_to_vmem [thread:$0]  %s3613_s3, 2048, %s3228_s20, [#allocation10], %s3158_s29, %s3158_s29, %s3159_s30  }
  0x25   :  { %s3160_s24 = smov [#allocation3]   ;;  %s3161_s26 = smov [#allocation8]  }
  0x26   :  { %s26_s25 = sshll.u32 %s3160_s24, 4  ;;  %s50_s27 = sshll.u32 %s3161_s26, 4  ;;  %s27_s25 = int_to_ptr.vmem [resolvable:$true] %s26_s25  ;;  %s3265_s27 = int_to_ptr.vmem [resolvable:$true] %s50_s27 }
  0x27   :  { %s3036_s13 = scalar_lea.hbm %s3610_s0, 512 }
  0x28   :  { %p3037_p2 = scmp.ne.s32.totalorder %s3610_s0, %s3036_s13  ;;  %p3040_p3 = scmp.lt.u32.totalorder %s3036_s13, %s3610_s0 }
  0x2a   :  { %p3042_p4 = pnand %p3040_p3, %p3037_p2 }
  0x2c   :  { %3045 = shalt.err (!%p3042_p4)
}
  0x2d   :  { %s3046_s3 = scalar_lea.vmem %s27_s25, 512  ;;  %p3051_p6 = scmp.lt.s32.totalorder %s27_s25, %s27_s25 }
  0x2e   :  { %p3047_p5 = scmp.ne.s32.totalorder %s27_s25, %s3046_s3  ;;  %p3052_p7 = scmp.lt.s32.totalorder %s3046_s3, %s3046_s3 }
  0x30   :  { %p3053_p8 = por %p3052_p7, %p3051_p6 }
  0x32   :  { %p3054_p9 = pnand %p3053_p8, %p3047_p5 }
  0x34   :  { %3057 = shalt.err (!%p3054_p9)
}
  0x35   :  { %32 = dma.hbm_to_vmem [thread:$0]  %s3610_s0, 512, %s27_s25, [#allocation4], %s3158_s29, %s3158_s29, %s3159_s30  }
  0x36   :  { %s3058_s23 = scalar_lea.hbm %s3612_s2, 2048 }
  0x37   :  { %p3059_p10 = scmp.ne.s32.totalorder %s3612_s2, %s3058_s23  ;;  %p3062_p11 = scmp.lt.u32.totalorder %s3058_s23, %s3612_s2 }
  0x39   :  { %p3064_p12 = pnand %p3062_p11, %p3059_p10 }
  0x3b   :  { %3067 = shalt.err (!%p3064_p12)
}
  0x3c   :  { %s3068_s28 = scalar_lea.vmem %s3265_s27, 2048  ;;  %p3073_p0 = scmp.lt.s32.totalorder %s3265_s27, %s3265_s27 }
  0x3d   :  { %p3069_p13 = scmp.ne.s32.totalorder %s3265_s27, %s3068_s28  ;;  %p3074_p1 = scmp.lt.s32.totalorder %s3068_s28, %s3068_s28 }
  0x3f   :  { %p3075_p2 = por %p3074_p1, %p3073_p0 }
  0x41   :  { %p3076_p3 = pnand %p3075_p2, %p3069_p13 }
  0x43   :  { %3079 = shalt.err (!%p3076_p3)
}
  0x44   :  { %56 = dma.hbm_to_vmem [thread:$0]  %s3612_s2, 2048, %s3265_s27, [#allocation7], %s3158_s29, %s3158_s29, %s3159_s30  }
  0x45   :  { %s3162_s12 = smov [#allocation11]   ;;  %s3163_s14 = smov [#allocation12]  }
  0x46   :  { %s74_s13 = sshll.u32 %s3162_s12, 4  ;;  %s90_s15 = sshll.u32 %s3163_s14, 4  ;;  %s75_s13 = int_to_ptr.vmem [resolvable:$true] %s74_s13  ;;  %s3302_s15 = int_to_ptr.vmem [resolvable:$true] %s90_s15 }
  0x47   :  { %s3080_s3 = scalar_lea.hbm %s3614_s4, 2048 }
  0x48   :  { %p3081_p4 = scmp.ne.s32.totalorder %s3614_s4, %s3080_s3  ;;  %p3084_p5 = scmp.lt.u32.totalorder %s3080_s3, %s3614_s4 }
  0x4a   :  { %p3086_p6 = pnand %p3084_p5, %p3081_p4 }
  0x4c   :  { %3089 = shalt.err (!%p3086_p6)
}
  0x4d   :  { %s3090_s2 = scalar_lea.vmem %s75_s13, 2048  ;;  %p3095_p8 = scmp.lt.s32.totalorder %s75_s13, %s75_s13 }
  0x4e   :  { %p3091_p7 = scmp.ne.s32.totalorder %s75_s13, %s3090_s2  ;;  %p3096_p9 = scmp.lt.s32.totalorder %s3090_s2, %s3090_s2 }
  0x50   :  { %p3097_p10 = por %p3096_p9, %p3095_p8 }
  0x52   :  { %p3098_p11 = pnand %p3097_p10, %p3091_p7 }
  0x54   :  { %3101 = shalt.err (!%p3098_p11)
}
  0x55   :  { %80 = dma.hbm_to_vmem [thread:$0]  %s3614_s4, 2048, %s75_s13, [#allocation10], %s3158_s29, %s3158_s29, %s3159_s30  }
  0x56   :  { %s3102_s24 = scalar_lea.hbm %s3617_s7, 2048 }
  0x57   :  { %p3103_p12 = scmp.ne.s32.totalorder %s3617_s7, %s3102_s24  ;;  %p3106_p13 = scmp.lt.u32.totalorder %s3102_s24, %s3617_s7 }
  0x59   :  { %p3108_p0 = pnand %p3106_p13, %p3103_p12 }
  0x5b   :  { %3111 = shalt.err (!%p3108_p0)
}
  0x5c   :  { %s3112_s12 = scalar_lea.vmem %s3302_s15, 2048  ;;  %p3117_p2 = scmp.lt.s32.totalorder %s3302_s15, %s3302_s15 }
  0x5d   :  { %p3113_p1 = scmp.ne.s32.totalorder %s3302_s15, %s3112_s12  ;;  %p3118_p3 = scmp.lt.s32.totalorder %s3112_s12, %s3112_s12 }
  0x5f   :  { %p3119_p4 = por %p3118_p3, %p3117_p2 }
  0x61   :  { %p3120_p5 = pnand %p3119_p4, %p3113_p1 }
  0x63   :  { %3123 = shalt.err (!%p3120_p5)
}
  0x64   :  { %96 = dma.hbm_to_vmem [thread:$0]  %s3617_s7, 2048, %s3302_s15, [#allocation13], %s3158_s29, %s3158_s29, %s3159_s30  }
  0x65   :  { %3146 = dma.done.wait [#allocation4], 512  }
  0x66   :  { %3147 = vsyncadd [#allocation4], 4294966784 }
  0x67   :  { %3148 = dma.done.wait [#allocation7], 4096  }
  0x68   :  { %3149 = vsyncadd [#allocation7], 4294963200 }
  0x69   :  { %3150 = dma.done.wait [#allocation10], 4096  }
  0x6a   :  { %3151 = vsyncadd [#allocation10], 4294963200 }
  0x6b   :  { %3152 = dma.done.wait [#allocation13], 2048  }
  0x6c   :  { %3153 = vsyncadd [#allocation13], 4294965248  ;;  %v226_v0 = vld [vmem:[#allocation8] sm:$0xff]  ;;  %v227_v1 = vld [vmem:[#allocation8 + $0x8] sm:$0xff]  ;;  %vm428_vm0 = vcmask 261120   ;;  %s3164_s7 = smov 96  }
  0x6d   :  { %v228_v2 = vld [vmem:[#allocation8 + $0x10] sm:$0xff]  ;;  %v2629_v3 = vpack.c.bf16 %v227_v1, %v226_v0  ;;  %v229_v4 = vld [vmem:[#allocation8 + $0x18] sm:$0xff]  ;;  %v230_v6 = vld [vmem:[#allocation8 + $0x20] sm:$0xff]  ;;  %s3165_s14 = smov 64   ;;  %s3166_s15 = smov 32   ;;  %vm720_vm2 = vcmask 523520  }
  0x6e   :  { %v2633_v5 = vpack.c.bf16 %v229_v4, %v228_v2  ;;  %v231_v7 = vld [vmem:[#allocation8 + $0x28] sm:$0xff]  ;;  %v125_v8 = vld [vmem:[#allocation6] sm:$0xff]  ;;  %v127_v11 = vld [vmem:[#allocation6 + $0x10] sm:$0xff]  ;;  %vm726_vm3 = vcmask 785920   ;;  %vm732_vm4 = vcmask 1048320  }
  0x6f   :  { %2630 = vmatprep.subr.bf16.mxu1 %v2629_v3  ;;  %v126_v9 = vld [vmem:[#allocation6 + $0x8] sm:$0xff]  ;;  %v128_v12 = vld [vmem:[#allocation6 + $0x18] sm:$0xff]  ;;  %v2637_v13 = vpack.c.bf16 %v231_v7, %v230_v6  ;;  %v129_v15 = vld [vmem:[#allocation6 + $0x20] sm:$0xff] }
  0x70   :  { %2632 = vmatpush3.bf16.msra.mxu1 %v2629_v3  ;;  %v2597_v10 = vpack.c.bf16 %v126_v9, %v125_v8  ;;  %v2601_v14 = vpack.c.bf16 %v128_v12, %v127_v11  ;;  %v130_v16 = vld [vmem:[#allocation6 + $0x28] sm:$0xff]  ;;  %v232_v17 = vld [vmem:[#allocation8 + $0x30] sm:$0xff]  ;;  %v233_v18 = vld [vmem:[#allocation8 + $0x38] sm:$0xff] }
  0x71   :  { %2634 = vmatprep.subr.bf16.mxu1 %v2633_v5  ;;  %v2605_v19 = vpack.c.bf16 %v130_v16, %v129_v15  ;;  %v2641_v20 = vpack.c.bf16 %v233_v18, %v232_v17  ;;  %v131_v21 = vld [vmem:[#allocation6 + $0x30] sm:$0xff]  ;;  %v132_v22 = vld [vmem:[#allocation6 + $0x38] sm:$0xff]  ;;  %v234_v23 = vld [vmem:[#allocation8 + $0x40] sm:$0xff] }
  0x72   :  { %2598 = vmatprep.subr.bf16.mxu0 %v2597_v10  ;;  %v235_v24 = vld [vmem:[#allocation8 + $0x48] sm:$0xff]  ;;  %v2609_v25 = vpack.c.bf16 %v132_v22, %v131_v21  ;;  %v133_v27 = vld [vmem:[#allocation6 + $0x40] sm:$0xff]  ;;  %v236_v29 = vld [vmem:[#allocation8 + $0x50] sm:$0xff] }
  0x73   :  { %2600 = vmatpush3.bf16.msra.mxu0 %v2597_v10  ;;  %v2645_v26 = vpack.c.bf16 %v235_v24, %v234_v23  ;;  %v134_v28 = vld [vmem:[#allocation6 + $0x48] sm:$0xff]  ;;  %v237_v30 = vld [vmem:[#allocation8 + $0x58] sm:$0xff]  ;;  %v135_v33 = vld [vmem:[#allocation6 + $0x50] sm:$0xff] }
  0x74   :  { %2636 = vmatpush3.bf16.msra.mxu1 %v2633_v5  ;;  %2602 = vmatprep.subr.bf16.mxu0 %v2601_v14  ;;  %v2613_v31 = vpack.c.bf16 %v134_v28, %v133_v27  ;;  %v2649_v32 = vpack.c.bf16 %v237_v30, %v236_v29  ;;  %v136_v34 = vld [vmem:[#allocation6 + $0x58] sm:$0xff]  ;;  %v238_v35 = vld [vmem:[#allocation8 + $0x60] sm:$0xff]  ;;  %v239_v36 = vld [vmem:[#allocation8 + $0x68] sm:$0xff] }
  0x75   :  { %2638 = vmatprep.subr.bf16.mxu1 %v2637_v13  ;;  %v2617_v37 = vpack.c.bf16 %v136_v34, %v135_v33  ;;  %v2653_v38 = vpack.c.bf16 %v239_v36, %v238_v35  ;;  %v137_v39 = vld [vmem:[#allocation6 + $0x60] sm:$0xff]  ;;  %v138_v40 = vld [vmem:[#allocation6 + $0x68] sm:$0xff]  ;;  %v240_v41 = vld [vmem:[#allocation8 + $0x70] sm:$0xff] }
  0x76   :  { %v241_v42 = vld [vmem:[#allocation8 + $0x78] sm:$0xff]  ;;  %v2621_v43 = vpack.c.bf16 %v138_v40, %v137_v39  ;;  %v139_v45 = vld [vmem:[#allocation6 + $0x70] sm:$0xff]  ;;  %v3339_v48 = vld [vmem:[#allocation3 + $0x8] sm:$0xff] }
  0x77   :  { %2604 = vmatpush3.bf16.msra.mxu0 %v2601_v14  ;;  %v2657_v44 = vpack.c.bf16 %v241_v42, %v240_v41  ;;  %v140_v46 = vld [vmem:[#allocation6 + $0x78] sm:$0xff]  ;;  %vm3349_vm1 = vmpackc.low %vm428_vm0, %vm428_vm0  ;;  %v327_v63 = vld [vmem:[#allocation9] sm:$0xff] }
  0x78   :  { %2640 = vmatpush3.bf16.msra.mxu1 %v2637_v13  ;;  %2606 = vmatprep.subr.bf16.mxu0 %v2605_v19  ;;  %v2625_v47 = vpack.c.bf16 %v140_v46, %v139_v45  ;;  %v3342_v49 = vld [vmem:[#allocation3 + $0x18] sm:$0xff]  ;;  %v328_v0 = vld [vmem:[#allocation9 + $0x8] sm:$0xff]  ;;  %v329_v1 = vld [vmem:[#allocation9 + $0x10] sm:$0xff] }
  0x79   :  { %2642 = vmatprep.subr.bf16.mxu1 %v2641_v20  ;;  %v2661_v2 = vpack.c.bf16 %v328_v0, %v327_v63  ;;  %v330_v3 = vld [vmem:[#allocation9 + $0x18] sm:$0xff]  ;;  %v331_v5 = vld [vmem:[#allocation9 + $0x20] sm:$0xff]  ;;  %v332_v6 = vld [vmem:[#allocation9 + $0x28] sm:$0xff] }
  0x7a   :  { %v2665_v4 = vpack.c.bf16 %v330_v3, %v329_v1  ;;  %v2669_v7 = vpack.c.bf16 %v332_v6, %v331_v5  ;;  %v333_v8 = vld [vmem:[#allocation9 + $0x30] sm:$0xff]  ;;  %v334_v9 = vld [vmem:[#allocation9 + $0x38] sm:$0xff]  ;;  %v335_v11 = vld [vmem:[#allocation9 + $0x40] sm:$0xff] }
  0x7b   :  { %2608 = vmatpush3.bf16.msra.mxu0 %v2605_v19  ;;  %v2673_v10 = vpack.c.bf16 %v334_v9, %v333_v8  ;;  %v336_v12 = vld [vmem:[#allocation9 + $0x48] sm:$0xff]  ;;  %v337_v14 = vld [vmem:[#allocation9 + $0x50] sm:$0xff]  ;;  %v338_v15 = vld [vmem:[#allocation9 + $0x58] sm:$0xff] }
  0x7c   :  { %2644 = vmatpush3.bf16.msra.mxu1 %v2641_v20  ;;  %2610 = vmatprep.subr.bf16.mxu0 %v2609_v25  ;;  %v2677_v13 = vpack.c.bf16 %v336_v12, %v335_v11  ;;  %v2681_v16 = vpack.c.bf16 %v338_v15, %v337_v14  ;;  %v339_v17 = vld [vmem:[#allocation9 + $0x60] sm:$0xff]  ;;  %v340_v18 = vld [vmem:[#allocation9 + $0x68] sm:$0xff]  ;;  %v341_v20 = vld [vmem:[#allocation9 + $0x70] sm:$0xff] }
  0x7d   :  { %2646 = vmatprep.subr.bf16.mxu1 %v2645_v26  ;;  %v2685_v19 = vpack.c.bf16 %v340_v18, %v339_v17  ;;  %v342_v21 = vld [vmem:[#allocation9 + $0x78] sm:$0xff] }
  0x7e   :  { %v2689_v22 = vpack.c.bf16 %v342_v21, %v341_v20 }
  0x7f   :  { %2612 = vmatpush3.bf16.msra.mxu0 %v2609_v25 }
  0x80   :  { %2648 = vmatpush3.bf16.msra.mxu1 %v2645_v26  ;;  %2614 = vmatprep.subr.bf16.mxu0 %v2613_v31 }
  0x81   :  { %2650 = vmatprep.subr.bf16.mxu1 %v2649_v32 }
  0x83   :  { %2616 = vmatpush3.bf16.msra.mxu0 %v2613_v31 }
  0x84   :  { %2652 = vmatpush3.bf16.msra.mxu1 %v2649_v32  ;;  %2618 = vmatprep.subr.bf16.mxu0 %v2617_v37 }
  0x85   :  { %2654 = vmatprep.subr.bf16.mxu1 %v2653_v38 }
  0x87   :  { %2620 = vmatpush3.bf16.msra.mxu0 %v2617_v37 }
  0x88   :  { %2656 = vmatpush3.bf16.msra.mxu1 %v2653_v38  ;;  %2622 = vmatprep.subr.bf16.mxu0 %v2621_v43 }
  0x89   :  { %2658 = vmatprep.subr.bf16.mxu1 %v2657_v44 }
  0x8b   :  { %2624 = vmatpush3.bf16.msra.mxu0 %v2621_v43 }
  0x8c   :  { %2660 = vmatpush3.bf16.msra.mxu1 %v2657_v44  ;;  %2626 = vmatprep.subr.bf16.mxu0 %v2625_v47 }
  0x8f   :  { %2366 = vmatmul.mubr.f32.vlgmr.msra.gmra.mrb[0].mxu1 %v3339_v48  ;;  %2628 = vmatpush3.bf16.msra.mxu0 %v2625_v47 }
  0x90   :  { %2662 = vmatprep.subr.bf16.mxu0 %v2661_v2 }
  0x92   :  { %2328 = vmatmul.mubr.f32.vlgmr.msra.gmra.mrb[0].mxu0 %v3339_v48 }
  0x93   :  { %2369 = vmatmul.mubr.f32.gmra.mrb[2].mxu1 %v3342_v49  ;;  %2664 = vmatpush3.bf16.msra.mxu0 %v2661_v2 }
  0x94   :  { %2666 = vmatprep.subr.bf16.mxu0 %v2665_v4 }
  0x96   :  { %2331 = vmatmul.mubr.f32.gmra.mrb[2].mxu0 %v3342_v49 }
  0x97   :  { %2668 = vmatpush3.bf16.msra.mxu0 %v2665_v4 }
  0x98   :  { %2670 = vmatprep.subr.bf16.mxu0 %v2669_v7 }
  0x9b   :  { %2672 = vmatpush3.bf16.msra.mxu0 %v2669_v7 }
  0x9c   :  { %2674 = vmatprep.subr.bf16.mxu0 %v2673_v10 }
  0x9f   :  { %2676 = vmatpush3.bf16.msra.mxu0 %v2673_v10 }
  0xa0   :  { %2678 = vmatprep.subr.bf16.mxu0 %v2677_v13 }
  0xa3   :  { %2680 = vmatpush3.bf16.msra.mxu0 %v2677_v13 }
  0xa4   :  { %2682 = vmatprep.subr.bf16.mxu0 %v2681_v16 }
  0xa7   :  { %2684 = vmatpush3.bf16.msra.mxu0 %v2681_v16 }
  0xa8   :  { %2686 = vmatprep.subr.bf16.mxu0 %v2685_v19 }
  0xab   :  { %2688 = vmatpush3.bf16.msra.mxu0 %v2685_v19 }
  0xac   :  { %2690 = vmatprep.subr.bf16.mxu0 %v2689_v22 }
  0xaf   :  { %2692 = vmatpush3.bf16.msra.mxu0 %v2689_v22 }
  0xb2   :  { %2404 = vmatmul.mubr.f32.vlgmr.msra.gmra.mrb[4].mxu0 %v3339_v48 }
  0xb6   :  { %2407 = vmatmul.mubr.f32.gmra.mrb[6].mxu0 %v3342_v49 }
 0x162   :  { %v2367_v50 = vpop.f32.mrb[0].mxu1 }
 0x163   :  { %v308_v51 = vpop.f32.mrb[1].mxu1 }
 0x164   :  { %v2693_v53 = vpack.c.bf16 %v2367_v50, %v308_v51  ;;  %v3353_v54 = vpack.i.bf16 %v2367_v50, %v308_v51 }
 0x165   :  { %v3355_v55 = vpop.f32.mrb[0].mxu0 }
 0x166   :  { %2695 = vmatprep.subr.msk.bf16.mxu1 %vm3349_vm1, %v2693_v53  ;;  %v2370_v56 = vpop.f32.mrb[2].mxu1  ;;  %v3359_v57 = vpop.f32.mrb[1].mxu0 }
 0x167   :  { %2698 = vmatpush3.bf16.xpose.msk.msra.mxu1 %vm3349_vm1, %v2693_v53  ;;  %v318_v58 = vpop.f32.mrb[3].mxu1  ;;  %2417 = vmatprep.mubr.msk.f32.mxu1 %vm428_vm0, %v3359_v57 }
 0x168   :  { %v2699_v59 = vpack.c.bf16 %v2370_v56, %v318_v58  ;;  %v3365_v60 = vpack.i.bf16 %v2370_v56, %v318_v58 }
 0x169   :  { %v3367_v61 = vpop.f32.mrb[2].mxu0 }
 0x16a   :  { %2701 = vmatprep.subr.msk.bf16.mxu1 %vm3349_vm1, %v2699_v59  ;;  %v3371_v62 = vpop.f32.mrb[3].mxu0 }
 0x16f   :  { %2704 = vmatpush3.bf16.xpose.msk.msra.mxu1 %vm3349_vm1, %v2699_v59 }
 0x176   :  { %2418 = vmatmul.mubr.msk.f32.vlgmr.msra.gmra.mrb[4].mxu1 %vm428_vm0, %v3355_v55 }
 0x177   :  { %2420 = vmatprep.mubr.msk.f32.mxu1 %vm428_vm0, %v3371_v62 }
 0x17a   :  { %2421 = vmatmul.mubr.msk.f32.gmra.mrb[6].mxu1 %vm428_vm0, %v3367_v61 }
 0x185   :  { %v2405_v35 = vpop.f32.mrb[4].mxu0 }
 0x186   :  { %v409_v36 = vpop.f32.mrb[5].mxu0 }
 0x187   :  { %v2705_v1 = vpack.c.bf16 %v2405_v35, %v409_v36  ;;  %v3391_v3 = vpack.i.bf16 %v2405_v35, %v409_v36 }
 0x189   :  { %v2408_v0 = vpop.f32.mrb[6].mxu0  ;;  %2706 = vmatprep.subr.bf16.mxu1 %v2705_v1 }
 0x18a   :  { %v419_v2 = vpop.f32.mrb[7].mxu0  ;;  %2708 = vmatpush3.bf16.msra.mxu1 %v2705_v1 }
 0x18b   :  { %v2709_v4 = vpack.c.bf16 %v2408_v0, %v419_v2  ;;  %v3393_v5 = vpack.i.bf16 %v2408_v0, %v419_v2 }
 0x18d   :  { %2710 = vmatprep.subr.bf16.mxu1 %v2709_v4 }
 0x18e   :  { %2712 = vmatpush3.bf16.msra.mxu1 %v2709_v4 }
 0x249   :  { %v2419_v23 = vpop.f32.mrb[4].mxu1 }
 0x24a   :  { %v519_v24 = vpop.f32.mrb[5].mxu1  ;;  %v539_v26 = vmul.f32 0.17677669, %v2419_v23 }
 0x24b   :  { %v538_v25 = vmul.f32 0.17677669, %v519_v24 }
 0x24c   :  { %v545_v32 = vsel %vm428_vm0, %v539_v26, -inf }
 0x24d   :  { %v2422_v27 = vpop.f32.mrb[6].mxu1  ;;  %v542_v28 = vsel %vm428_vm0, %v538_v25, -inf }
 0x24e   :  { %543 = vmax.xlane.f32.xlu0 %v542_v28  ;;  %v529_v29 = vpop.f32.mrb[7].mxu1  ;;  %v541_v31 = vmul.f32 0.17677669, %v2422_v27 }
 0x24f   :  { %v540_v30 = vmul.f32 0.17677669, %v529_v29 }
 0x250   :  { %v551_v34 = vsel %vm428_vm0, %v541_v31, -inf }
 0x251   :  { %v548_v33 = vsel %vm428_vm0, %v540_v30, -inf }
 0x252   :  { %546 = vmax.xlane.f32.xlu0 %v545_v32  ;;  %549 = vmax.xlane.f32.xlu1 %v548_v33 }
 0x256   :  { %552 = vmax.xlane.f32.xlu1 %v551_v34 }
 0x2db   :  { %v544_v37 = vpop.xlane.xlu0 %543 }
 0x2dc   :  { %v554_v38 = vsub.f32 %v538_v25, %v544_v37 }
 0x2de   :  { %v558_v39 = vmul.f32 1.442695, %v554_v38 }
 0x2df   :  { %v547_v40 = vpop.xlane.xlu0 %546  ;;  %v550_v41 = vpop.xlane.xlu1 %549 }
 0x2e0   :  { %2910 = vpow2.f32 %v558_v39  ;;  %v555_v42 = vsub.f32 %v539_v26, %v547_v40  ;;  %v556_v43 = vsub.f32 %v540_v30, %v550_v41 }
 0x2e2   :  { %v560_v44 = vmul.f32 1.442695, %v555_v42  ;;  %v562_v45 = vmul.f32 1.442695, %v556_v43 }
 0x2e3   :  { %v553_v46 = vpop.xlane.xlu1 %552 }
 0x2e4   :  { %2912 = vpow2.f32 %v560_v44  ;;  %v557_v47 = vsub.f32 %v541_v31, %v553_v46 }
 0x2e5   :  { %2914 = vpow2.f32 %v562_v45 }
 0x2e6   :  { %v564_v48 = vmul.f32 1.442695, %v557_v47 }
 0x2e8   :  { %2916 = vpow2.f32 %v564_v48 }
 0x2ea   :  { %v2911_v49 = vpop.eup %2910 }
 0x2eb   :  { %v566_v50 = vsel %vm428_vm0, %v2911_v49, 0.0 }
 0x2ec   :  { %567 = vadd.xlane.f32.xlu0 %v566_v50 }
 0x2ee   :  { %v2913_v51 = vpop.eup %2912 }
 0x2ef   :  { %v2915_v53 = vpop.eup %2914  ;;  %v569_v56 = vsel %vm428_vm0, %v2913_v51, 0.0 }
 0x2f0   :  { %570 = vadd.xlane.f32.xlu1 %v569_v56  ;;  %v572_v58 = vsel %vm428_vm0, %v2915_v53, 0.0 }
 0x2f1   :  { %573 = vadd.xlane.f32.xlu0 %v572_v58 }
 0x2f2   :  { %v2917_v59 = vpop.eup %2916 }
 0x2f3   :  { %v575_v63 = vsel %vm428_vm0, %v2917_v59, 0.0 }
 0x2f4   :  { %576 = vadd.xlane.f32.xlu1 %v575_v63 }
 0x305   :  { %2856 = vrot.lane.b32.xlu1 %v3365_v60, %s3164_s7 }
 0x307   :  { %2851 = vrot.lane.b32.xlu0 %v3353_v54, %s3164_s7 }
 0x309   :  { %734 = vrot.lane.b32.xlu1 %v3359_v57, %s3164_s7 }
 0x30b   :  { %738 = vrot.lane.b32.xlu0 %v3371_v62, %s3164_s7 }
 0x30d   :  { %736 = vrot.lane.b32.xlu1 %v3355_v55, %s3164_s7 }
 0x311   :  { %740 = vrot.lane.b32.xlu1 %v3367_v61, %s3164_s7 }
 0x379   :  { %v568_v6 = vpop.xlane.xlu0 %567 }
 0x37a   :  { %2918 = vrcp.f32 %v568_v6 }
 0x37d   :  { %v571_v7 = vpop.xlane.xlu1 %570 }
 0x37e   :  { %v574_v8 = vpop.xlane.xlu0 %573  ;;  %2920 = vrcp.f32 %v571_v7 }
 0x37f   :  { %2922 = vrcp.f32 %v574_v8 }
 0x381   :  { %v577_v9 = vpop.xlane.xlu1 %576 }
 0x382   :  { %v2852_v10 = vpop.permute.xlu0 %2851  ;;  %2924 = vrcp.f32 %v577_v9 }
 0x383   :  { %v2854_v11 = vunpack.i.h.bf16 %v2852_v10  ;;  %v2853_v12 = vunpack.i.l.bf16 %v2852_v10 }
 0x384   :  { %v2919_v13 = vpop.eup %2918 }
 0x385   :  { %v2713_v14 = vpack.c.bf16 %v2854_v11, %v2853_v12  ;;  %v2857_v15 = vpop.permute.xlu1 %2856  ;;  %v579_v16 = vmul.f32 %v2919_v13, %v2911_v49 }
 0x386   :  { %v2859_v17 = vunpack.i.h.bf16 %v2857_v15  ;;  %v2858_v18 = vunpack.i.l.bf16 %v2857_v15  ;;  %v739_v28 = vpop.permute.xlu0 %738 }
 0x387   :  { %2715 = vmatprep.subr.msk.bf16.mxu1 %vm3349_vm1, %v2713_v14  ;;  %2431 = vmatprep.mubr.msk.f32.mxu1 %vm428_vm0, %v579_v16 }
 0x388   :  { %v2921_v19 = vpop.eup %2920  ;;  %v2719_v23 = vpack.c.bf16 %v2859_v17, %v2858_v18 }
 0x389   :  { %v2923_v20 = vpop.eup %2922  ;;  %v581_v21 = vmul.f32 %v2921_v19, %v2913_v51  ;;  %v735_v26 = vpop.permute.xlu1 %734 }
 0x38a   :  { %v583_v22 = vmul.f32 %v2923_v20, %v2915_v53 }
 0x38b   :  { %2432 = vmatmul.mubr.msk.f32.vlgmr.msra.gmra.mrb[8].mxu1 %vm428_vm0, %v581_v21 }
 0x38c   :  { %v2925_v24 = vpop.eup %2924  ;;  %2718 = vmatpush3.bf16.xpose.msk.msra.mxu1 %vm3349_vm1, %v2713_v14  ;;  %2434 = vmatprep.mubr.msk.f32.mxu1 %vm428_vm0, %v583_v22 }
 0x38d   :  { %2721 = vmatprep.subr.msk.bf16.mxu1 %vm3349_vm1, %v2719_v23  ;;  %v585_v25 = vmul.f32 %v2925_v24, %v2917_v59  ;;  %v737_v27 = vpop.permute.xlu1 %736 }
 0x38f   :  { %2435 = vmatmul.mubr.msk.f32.gmra.mrb[10].mxu1 %vm428_vm0, %v585_v25 }
 0x390   :  { %2445 = vmatprep.mubr.msk.f32.mxu1 %vm428_vm0, %v735_v26 }
 0x391   :  { %v741_v29 = vpop.permute.xlu1 %740 }
 0x394   :  { %2724 = vmatpush3.bf16.xpose.msk.msra.mxu1 %vm3349_vm1, %v2719_v23 }
 0x39b   :  { %2446 = vmatmul.mubr.msk.f32.vlgmr.msra.gmra.mrb[12].mxu1 %vm428_vm0, %v737_v27 }
 0x39c   :  { %2448 = vmatprep.mubr.msk.f32.mxu1 %vm428_vm0, %v739_v28 }
 0x39f   :  { %2449 = vmatmul.mubr.msk.f32.gmra.mrb[14].mxu1 %vm428_vm0, %v741_v29 }
 0x45e   :  { %v3423_v30 = vpop.f32.mrb[8].mxu1 }
 0x45f   :  { %v3425_v31 = vpop.f32.mrb[9].mxu1 }
 0x462   :  { %v3427_v32 = vpop.f32.mrb[10].mxu1 }
 0x463   :  { %v3429_v33 = vpop.f32.mrb[11].mxu1 }
 0x46e   :  { %v2447_v34 = vpop.f32.mrb[12].mxu1 }
 0x46f   :  { %v852_v35 = vmul.f32 0.17677669, %v2447_v34  ;;  %v832_v36 = vpop.f32.mrb[13].mxu1 }
 0x470   :  { %v851_v37 = vmul.f32 0.17677669, %v832_v36 }
 0x471   :  { %v858_v38 = vsel %vm428_vm0, %v852_v35, -inf }
 0x472   :  { %859 = vmax.xlane.f32.xlu1 %v858_v38  ;;  %v2450_v39 = vpop.f32.mrb[14].mxu1  ;;  %v855_v40 = vsel %vm428_vm0, %v851_v37, -inf }
 0x473   :  { %856 = vmax.xlane.f32.xlu0 %v855_v40  ;;  %v842_v41 = vpop.f32.mrb[15].mxu1  ;;  %v854_v43 = vmul.f32 0.17677669, %v2450_v39 }
 0x474   :  { %v853_v42 = vmul.f32 0.17677669, %v842_v41 }
 0x475   :  { %v864_v45 = vsel %vm428_vm0, %v854_v43, -inf }
 0x476   :  { %v861_v44 = vsel %vm428_vm0, %v853_v42, -inf }
 0x477   :  { %862 = vmax.xlane.f32.xlu0 %v861_v44 }
 0x47b   :  { %865 = vmax.xlane.f32.xlu0 %v864_v45 }
 0x4ff   :  { %v860_v46 = vpop.xlane.xlu1 %859 }
 0x500   :  { %v868_v47 = vsub.f32 %v852_v35, %v860_v46  ;;  %v857_v48 = vpop.xlane.xlu0 %856 }
 0x501   :  { %v867_v49 = vsub.f32 %v851_v37, %v857_v48 }
 0x502   :  { %v873_v50 = vmul.f32 1.442695, %v868_v47 }
 0x503   :  { %v871_v51 = vmul.f32 1.442695, %v867_v49 }
 0x504   :  { %2926 = vpow2.f32 %v873_v50  ;;  %v863_v63 = vpop.xlane.xlu0 %862 }
 0x505   :  { %2928 = vpow2.f32 %v871_v51  ;;  %v869_v0 = vsub.f32 %v853_v42, %v863_v63 }
 0x507   :  { %v875_v1 = vmul.f32 1.442695, %v869_v0 }
 0x508   :  { %v866_v2 = vpop.xlane.xlu0 %865 }
 0x509   :  { %v870_v4 = vsub.f32 %v854_v43, %v866_v2  ;;  %2930 = vpow2.f32 %v875_v1 }
 0x50b   :  { %v877_v6 = vmul.f32 1.442695, %v870_v4 }
 0x50d   :  { %2932 = vpow2.f32 %v877_v6 }
 0x50e   :  { %v2927_v53 = vpop.eup %2926 }
 0x50f   :  { %v2929_v56 = vpop.eup %2928  ;;  %v882_v58 = vsel %vm428_vm0, %v2927_v53, 0.0 }
 0x510   :  { %883 = vadd.xlane.f32.xlu1 %v882_v58  ;;  %v879_v59 = vsel %vm428_vm0, %v2929_v56, 0.0 }
 0x511   :  { %880 = vadd.xlane.f32.xlu0 %v879_v59 }
 0x513   :  { %v2931_v7 = vpop.eup %2930 }
 0x514   :  { %v885_v8 = vsel %vm428_vm0, %v2931_v7, 0.0 }
 0x517   :  { %v2933_v9 = vpop.eup %2932 }
 0x518   :  { %v888_v10 = vsel %vm428_vm0, %v2933_v9, 0.0 }
 0x521   :  { %2866 = vrot.lane.b32.xlu1 %v3393_v5, %s3164_s7 }
 0x525   :  { %2871 = vrot.lane.b32.xlu1 %v3353_v54, %s3165_s14 }
 0x527   :  { %2861 = vrot.lane.b32.xlu0 %v3391_v3, %s3164_s7 }
 0x529   :  { %2876 = vrot.lane.b32.xlu1 %v3365_v60, %s3165_s14 }
 0x546   :  { %886 = vadd.xlane.f32.xlu0 %v885_v8 }
 0x54d   :  { %889 = vadd.xlane.f32.xlu1 %v888_v10 }
 0x55c   :  { %1060 = vrot.lane.b32.xlu0 %v3359_v57, %s3165_s14 }
 0x55e   :  { %1062 = vrot.lane.b32.xlu1 %v3355_v55, %s3165_s14 }
 0x560   :  { %1064 = vrot.lane.b32.xlu0 %v3371_v62, %s3165_s14 }
 0x562   :  { %1066 = vrot.lane.b32.xlu1 %v3367_v61, %s3165_s14 }
 0x59d   :  { %v884_v11 = vpop.xlane.xlu1 %883 }
 0x59e   :  { %v881_v12 = vpop.xlane.xlu0 %880 }
 0x59f   :  { %2934 = vrcp.f32 %v881_v12 }
 0x5a0   :  { %2936 = vrcp.f32 %v884_v11 }
 0x5a1   :  { %v2867_v13 = vpop.permute.xlu1 %2866 }
 0x5a2   :  { %v2862_v14 = vpop.permute.xlu0 %2861  ;;  %v2869_v15 = vunpack.i.h.bf16 %v2867_v13  ;;  %v2868_v16 = vunpack.i.l.bf16 %v2867_v13 }
 0x5a3   :  { %v2864_v17 = vunpack.i.h.bf16 %v2862_v14  ;;  %v2863_v18 = vunpack.i.l.bf16 %v2862_v14 }
 0x5a4   :  { %v2729_v21 = vpack.c.bf16 %v2869_v15, %v2868_v16 }
 0x5a5   :  { %v2725_v19 = vpack.c.bf16 %v2864_v17, %v2863_v18  ;;  %v2872_v20 = vpop.permute.xlu1 %2871 }
 0x5a6   :  { %v2874_v22 = vunpack.i.h.bf16 %v2872_v20  ;;  %v2873_v23 = vunpack.i.l.bf16 %v2872_v20 }
 0x5a7   :  { %2726 = vmatprep.subr.bf16.mxu0 %v2725_v19 }
 0x5a8   :  { %2728 = vmatpush3.bf16.msra.mxu0 %v2725_v19  ;;  %v2733_v27 = vpack.c.bf16 %v2874_v22, %v2873_v23 }
 0x5a9   :  { %v2935_v24 = vpop.eup %2934  ;;  %2730 = vmatprep.subr.bf16.mxu0 %v2729_v21  ;;  %v2877_v29 = vpop.permute.xlu1 %2876 }
 0x5aa   :  { %v2937_v25 = vpop.eup %2936  ;;  %v892_v26 = vmul.f32 %v2935_v24, %v2929_v56  ;;  %v2879_v34 = vunpack.i.h.bf16 %v2877_v29  ;;  %v2878_v35 = vunpack.i.l.bf16 %v2877_v29 }
 0x5ab   :  { %v894_v28 = vmul.f32 %v2937_v25, %v2927_v53 }
 0x5ac   :  { %2732 = vmatpush3.bf16.msra.mxu0 %v2729_v21  ;;  %2459 = vmatprep.mubr.msk.f32.mxu0 %vm428_vm0, %v892_v26  ;;  %v2739_v36 = vpack.c.bf16 %v2879_v34, %v2878_v35 }
 0x5ad   :  { %2735 = vmatprep.subr.msk.bf16.mxu0 %vm3349_vm1, %v2733_v27 }
 0x5af   :  { %2460 = vmatmul.mubr.msk.f32.vlgmr.msra.gmra.mrb[8].mxu0 %vm428_vm0, %v894_v28 }
 0x5b5   :  { %2738 = vmatpush3.bf16.xpose.msk.msra.mxu0 %vm3349_vm1, %v2733_v27 }
 0x5b6   :  { %2741 = vmatprep.subr.msk.bf16.mxu0 %vm3349_vm1, %v2739_v36 }
 0x5bd   :  { %2744 = vmatpush3.bf16.xpose.msk.msra.mxu0 %vm3349_vm1, %v2739_v36 }
 0x5d3   :  { %v887_v37 = vpop.xlane.xlu0 %886 }
 0x5d4   :  { %2938 = vrcp.f32 %v887_v37 }
 0x5d7   :  { %v1061_v42 = vpop.permute.xlu0 %1060 }
 0x5da   :  { %v890_v38 = vpop.xlane.xlu1 %889 }
 0x5db   :  { %2940 = vrcp.f32 %v890_v38  ;;  %v1065_v45 = vpop.permute.xlu0 %1064 }
 0x5de   :  { %v2939_v39 = vpop.eup %2938  ;;  %v1063_v44 = vpop.permute.xlu1 %1062 }
 0x5df   :  { %v896_v40 = vmul.f32 %v2939_v39, %v2931_v7 }
 0x5e1   :  { %2462 = vmatprep.mubr.msk.f32.mxu0 %vm428_vm0, %v896_v40 }
 0x5e2   :  { %v1067_v46 = vpop.permute.xlu1 %1066 }
 0x5e5   :  { %v2941_v41 = vpop.eup %2940 }
 0x5e6   :  { %v898_v43 = vmul.f32 %v2941_v41, %v2933_v9 }
 0x5e8   :  { %2463 = vmatmul.mubr.msk.f32.gmra.mrb[10].mxu0 %vm428_vm0, %v898_v43 }
 0x5e9   :  { %2473 = vmatprep.mubr.msk.f32.mxu0 %vm428_vm0, %v1061_v42 }
 0x5ec   :  { %2474 = vmatmul.mubr.msk.f32.vlgmr.msra.gmra.mrb[12].mxu0 %vm428_vm0, %v1063_v44 }
 0x5ed   :  { %2476 = vmatprep.mubr.msk.f32.mxu0 %vm428_vm0, %v1065_v45 }
 0x5f0   :  { %2477 = vmatmul.mubr.msk.f32.gmra.mrb[14].mxu0 %vm428_vm0, %v1067_v46 }
 0x682   :  { %v3471_v47 = vpop.f32.mrb[8].mxu0 }
 0x683   :  { %v3473_v48 = vpop.f32.mrb[9].mxu0 }
 0x6bb   :  { %v3475_v49 = vpop.f32.mrb[10].mxu0 }
 0x6bc   :  { %v3477_v50 = vpop.f32.mrb[11].mxu0 }
 0x6bf   :  { %v2475_v51 = vpop.f32.mrb[12].mxu0 }
 0x6c0   :  { %v1178_v53 = vmul.f32 0.17677669, %v2475_v51  ;;  %v1158_v56 = vpop.f32.mrb[13].mxu0 }
 0x6c1   :  { %v1177_v58 = vmul.f32 0.17677669, %v1158_v56 }
 0x6c2   :  { %v1184_v59 = vsel %vm428_vm0, %v1178_v53, -inf }
 0x6c3   :  { %1185 = vmax.xlane.f32.xlu1 %v1184_v59  ;;  %v2478_v63 = vpop.f32.mrb[14].mxu0  ;;  %v1181_v0 = vsel %vm428_vm0, %v1177_v58, -inf }
 0x6c4   :  { %1182 = vmax.xlane.f32.xlu0 %v1181_v0  ;;  %v1168_v1 = vpop.f32.mrb[15].mxu0  ;;  %v1180_v4 = vmul.f32 0.17677669, %v2478_v63 }
 0x6c5   :  { %v1179_v2 = vmul.f32 0.17677669, %v1168_v1 }
 0x6c6   :  { %v1190_v7 = vsel %vm428_vm0, %v1180_v4, -inf }
 0x6c7   :  { %v1187_v6 = vsel %vm428_vm0, %v1179_v2, -inf }
 0x6c8   :  { %1188 = vmax.xlane.f32.xlu0 %v1187_v6 }
 0x6cc   :  { %1191 = vmax.xlane.f32.xlu0 %v1190_v7 }
 0x750   :  { %v1186_v8 = vpop.xlane.xlu1 %1185 }
 0x751   :  { %v1194_v9 = vsub.f32 %v1178_v53, %v1186_v8  ;;  %v1183_v10 = vpop.xlane.xlu0 %1182 }
 0x752   :  { %v1193_v11 = vsub.f32 %v1177_v58, %v1183_v10 }
 0x753   :  { %v1199_v12 = vmul.f32 1.442695, %v1194_v9 }
 0x754   :  { %v1197_v13 = vmul.f32 1.442695, %v1193_v11 }
 0x755   :  { %2942 = vpow2.f32 %v1199_v12  ;;  %v1189_v18 = vpop.xlane.xlu0 %1188 }
 0x756   :  { %2944 = vpow2.f32 %v1197_v13  ;;  %v1195_v19 = vsub.f32 %v1179_v2, %v1189_v18 }
 0x758   :  { %v1201_v20 = vmul.f32 1.442695, %v1195_v19 }
 0x759   :  { %v1192_v21 = vpop.xlane.xlu0 %1191 }
 0x75a   :  { %v1196_v22 = vsub.f32 %v1180_v4, %v1192_v21  ;;  %2946 = vpow2.f32 %v1201_v20 }
 0x75c   :  { %v1203_v23 = vmul.f32 1.442695, %v1196_v22 }
 0x75e   :  { %2948 = vpow2.f32 %v1203_v23 }
 0x75f   :  { %v2943_v14 = vpop.eup %2942 }
 0x760   :  { %v2945_v15 = vpop.eup %2944  ;;  %v1208_v16 = vsel %vm428_vm0, %v2943_v14, 0.0 }
 0x761   :  { %1209 = vadd.xlane.f32.xlu1 %v1208_v16  ;;  %v1205_v17 = vsel %vm428_vm0, %v2945_v15, 0.0 }
 0x762   :  { %1206 = vadd.xlane.f32.xlu0 %v1205_v17 }
 0x764   :  { %v2947_v24 = vpop.eup %2946 }
 0x765   :  { %v1211_v25 = vsel %vm428_vm0, %v2947_v24, 0.0 }
 0x768   :  { %v2949_v26 = vpop.eup %2948 }
 0x772   :  { %2886 = vrot.lane.b32.xlu1 %v3393_v5, %s3165_s14 }
 0x776   :  { %2891 = vrot.lane.b32.xlu1 %v3353_v54, %s3166_s15  ;;  %v1214_v54 = vsel %vm428_vm0, %v2949_v26, 0.0 }
 0x778   :  { %2881 = vrot.lane.b32.xlu0 %v3391_v3, %s3165_s14 }
 0x77a   :  { %2896 = vrot.lane.b32.xlu1 %v3365_v60, %s3166_s15 }
 0x797   :  { %1212 = vadd.xlane.f32.xlu0 %v1211_v25 }
 0x79e   :  { %1215 = vadd.xlane.f32.xlu1 %v1214_v54 }
 0x7ad   :  { %1382 = vrot.lane.b32.xlu0 %v3359_v57, %s3166_s15 }
 0x7af   :  { %1384 = vrot.lane.b32.xlu1 %v3355_v55, %s3166_s15 }
 0x7b1   :  { %1386 = vrot.lane.b32.xlu0 %v3371_v62, %s3166_s15 }
 0x7b3   :  { %1388 = vrot.lane.b32.xlu1 %v3367_v61, %s3166_s15 }
 0x7ee   :  { %v1210_v60 = vpop.xlane.xlu1 %1209 }
 0x7ef   :  { %v1207_v27 = vpop.xlane.xlu0 %1206 }
 0x7f0   :  { %2950 = vrcp.f32 %v1207_v27 }
 0x7f1   :  { %2952 = vrcp.f32 %v1210_v60 }
 0x7f2   :  { %v2887_v28 = vpop.permute.xlu1 %2886 }
 0x7f3   :  { %v2882_v29 = vpop.permute.xlu0 %2881  ;;  %v2889_v34 = vunpack.i.h.bf16 %v2887_v28  ;;  %v2888_v35 = vunpack.i.l.bf16 %v2887_v28 }
 0x7f4   :  { %v2884_v36 = vunpack.i.h.bf16 %v2882_v29  ;;  %v2883_v37 = vunpack.i.l.bf16 %v2882_v29 }
 0x7f5   :  { %v2749_v39 = vpack.c.bf16 %v2889_v34, %v2888_v35 }
 0x7f6   :  { %v2745_v57 = vpack.c.bf16 %v2884_v36, %v2883_v37  ;;  %v2892_v38 = vpop.permute.xlu1 %2891 }
 0x7f7   :  { %v2894_v55 = vunpack.i.h.bf16 %v2892_v38  ;;  %v2893_v40 = vunpack.i.l.bf16 %v2892_v38 }
 0x7f8   :  { %2746 = vmatprep.subr.bf16.mxu1 %v2745_v57 }
 0x7f9   :  { %2748 = vmatpush3.bf16.msra.mxu1 %v2745_v57  ;;  %v2753_v42 = vpack.c.bf16 %v2894_v55, %v2893_v40 }
 0x7fa   :  { %v2951_v62 = vpop.eup %2950  ;;  %2750 = vmatprep.subr.bf16.mxu1 %v2749_v39  ;;  %v2897_v44 = vpop.permute.xlu1 %2896 }
 0x7fb   :  { %v2953_v61 = vpop.eup %2952  ;;  %v1218_v41 = vmul.f32 %v2951_v62, %v2945_v15  ;;  %v2899_v45 = vunpack.i.h.bf16 %v2897_v44  ;;  %v2898_v46 = vunpack.i.l.bf16 %v2897_v44 }
 0x7fc   :  { %v1220_v43 = vmul.f32 %v2953_v61, %v2943_v14 }
 0x7fd   :  { %2752 = vmatpush3.bf16.msra.mxu1 %v2749_v39  ;;  %2487 = vmatprep.mubr.msk.f32.mxu1 %vm428_vm0, %v1218_v41  ;;  %v2759_v51 = vpack.c.bf16 %v2899_v45, %v2898_v46 }
 0x7fe   :  { %2755 = vmatprep.subr.msk.bf16.mxu1 %vm3349_vm1, %v2753_v42 }
 0x800   :  { %2488 = vmatmul.mubr.msk.f32.vlgmr.msra.gmra.mrb[16].mxu1 %vm428_vm0, %v1220_v43 }
 0x806   :  { %2758 = vmatpush3.bf16.xpose.msk.msra.mxu1 %vm3349_vm1, %v2753_v42 }
 0x807   :  { %2761 = vmatprep.subr.msk.bf16.mxu1 %vm3349_vm1, %v2759_v51 }
 0x80e   :  { %2764 = vmatpush3.bf16.xpose.msk.msra.mxu1 %vm3349_vm1, %v2759_v51 }
 0x824   :  { %v1213_v53 = vpop.xlane.xlu0 %1212 }
 0x825   :  { %2954 = vrcp.f32 %v1213_v53 }
 0x828   :  { %v1383_v0 = vpop.permute.xlu0 %1382 }
 0x82b   :  { %v1216_v56 = vpop.xlane.xlu1 %1215 }
 0x82c   :  { %2956 = vrcp.f32 %v1216_v56  ;;  %v1387_v4 = vpop.permute.xlu0 %1386 }
 0x82f   :  { %v2955_v58 = vpop.eup %2954  ;;  %v1385_v2 = vpop.permute.xlu1 %1384 }
 0x830   :  { %v1222_v59 = vmul.f32 %v2955_v58, %v2947_v24 }
 0x832   :  { %2490 = vmatprep.mubr.msk.f32.mxu1 %vm428_vm0, %v1222_v59 }
 0x833   :  { %v1389_v52 = vpop.permute.xlu1 %1388 }
 0x836   :  { %v2957_v63 = vpop.eup %2956 }
 0x837   :  { %v1224_v1 = vmul.f32 %v2957_v63, %v2949_v26 }
 0x839   :  { %2491 = vmatmul.mubr.msk.f32.gmra.mrb[18].mxu1 %vm428_vm0, %v1224_v1 }
 0x83a   :  { %2501 = vmatprep.mubr.msk.f32.mxu1 %vm428_vm0, %v1383_v0 }
 0x83d   :  { %2502 = vmatmul.mubr.msk.f32.vlgmr.msra.gmra.mrb[20].mxu1 %vm428_vm0, %v1385_v2 }
 0x83e   :  { %2504 = vmatprep.mubr.msk.f32.mxu1 %vm428_vm0, %v1387_v4 }
 0x841   :  { %2505 = vmatmul.mubr.msk.f32.gmra.mrb[22].mxu1 %vm428_vm0, %v1389_v52 }
 0x8d3   :  { %v2489_v6 = vpop.f32.mrb[16].mxu1 }
 0x8d4   :  { %v1315_v7 = vpop.f32.mrb[17].mxu1 }
 0x90c   :  { %v2492_v8 = vpop.f32.mrb[18].mxu1 }
 0x90d   :  { %v1325_v9 = vpop.f32.mrb[19].mxu1 }
 0x910   :  { %v2503_v10 = vpop.f32.mrb[20].mxu1 }
 0x911   :  { %v1500_v11 = vmul.f32 0.17677669, %v2503_v10  ;;  %v1480_v12 = vpop.f32.mrb[21].mxu1 }
 0x912   :  { %v1499_v13 = vmul.f32 0.17677669, %v1480_v12 }
 0x913   :  { %v1506_v14 = vsel %vm428_vm0, %v1500_v11, -inf }
 0x914   :  { %1507 = vmax.xlane.f32.xlu1 %v1506_v14  ;;  %v2506_v15 = vpop.f32.mrb[22].mxu1  ;;  %v1503_v16 = vsel %vm428_vm0, %v1499_v13, -inf }
 0x915   :  { %1504 = vmax.xlane.f32.xlu0 %v1503_v16  ;;  %v1490_v17 = vpop.f32.mrb[23].mxu1  ;;  %v1502_v19 = vmul.f32 0.17677669, %v2506_v15 }
 0x916   :  { %v1501_v18 = vmul.f32 0.17677669, %v1490_v17 }
 0x917   :  { %v1512_v21 = vsel %vm428_vm0, %v1502_v19, -inf }
 0x918   :  { %v1509_v20 = vsel %vm428_vm0, %v1501_v18, -inf }
 0x919   :  { %1510 = vmax.xlane.f32.xlu0 %v1509_v20 }
 0x91d   :  { %1513 = vmax.xlane.f32.xlu0 %v1512_v21 }
 0x9a1   :  { %v1508_v22 = vpop.xlane.xlu1 %1507 }
 0x9a2   :  { %v1516_v23 = vsub.f32 %v1500_v11, %v1508_v22  ;;  %v1505_v24 = vpop.xlane.xlu0 %1504  ;;  %v1710_v22 = vld [vmem:[#allocation11 + $0x10] sm:$0xff] }
 0x9a3   :  { %v1515_v25 = vsub.f32 %v1499_v13, %v1505_v24 }
 0x9a4   :  { %v1521_v26 = vmul.f32 1.442695, %v1516_v23  ;;  %v1711_v23 = vld [vmem:[#allocation11 + $0x18] sm:$0xff] }
 0x9a5   :  { %v1519_v54 = vmul.f32 1.442695, %v1515_v25  ;;  %v2777_v24 = vpack.c.bf16 %v1711_v23, %v1710_v22  ;;  %v1712_v25 = vld [vmem:[#allocation11 + $0x20] sm:$0xff]  ;;  %v1882_v23 = vld [vmem:[#allocation12 + $0x30] sm:$0xff] }
 0x9a6   :  { %2958 = vpow2.f32 %v1521_v26  ;;  %v1511_v60 = vpop.xlane.xlu0 %1510  ;;  %v1713_v26 = vld [vmem:[#allocation11 + $0x28] sm:$0xff] }
 0x9a7   :  { %2960 = vpow2.f32 %v1519_v54  ;;  %v1517_v27 = vsub.f32 %v1501_v18, %v1511_v60  ;;  %v1708_v18 = vld [vmem:[#allocation11] sm:$0xff]  ;;  %v2781_v54 = vpack.c.bf16 %v1713_v26, %v1712_v25  ;;  %v1714_v60 = vld [vmem:[#allocation11 + $0x30] sm:$0xff] }
 0x9a8   :  { %v1884_v26 = vld [vmem:[#allocation12 + $0x40] sm:$0xff] }
 0x9a9   :  { %v1523_v28 = vmul.f32 1.442695, %v1517_v27  ;;  %v1715_v27 = vld [vmem:[#allocation11 + $0x38] sm:$0xff] }
 0x9aa   :  { %v1514_v29 = vpop.xlane.xlu0 %1513 }
 0x9ab   :  { %2962 = vpow2.f32 %v1523_v28  ;;  %v1518_v34 = vsub.f32 %v1502_v19, %v1514_v29  ;;  %v1709_v19 = vld [vmem:[#allocation11 + $0x8] sm:$0xff]  ;;  %v1716_v28 = vld [vmem:[#allocation11 + $0x40] sm:$0xff] }
 0x9ac   :  { %v2773_v21 = vpack.c.bf16 %v1709_v19, %v1708_v18 }
 0x9ad   :  { %v1525_v35 = vmul.f32 1.442695, %v1518_v34  ;;  %v2785_v34 = vpack.c.bf16 %v1715_v27, %v1714_v60  ;;  %v1886_v27 = vld [vmem:[#allocation12 + $0x50] sm:$0xff] }
 0x9af   :  { %2964 = vpow2.f32 %v1525_v35  ;;  %v1717_v35 = vld [vmem:[#allocation11 + $0x48] sm:$0xff] }
 0x9b0   :  { %v2959_v36 = vpop.eup %2958 }
 0x9b1   :  { %v2961_v37 = vpop.eup %2960  ;;  %v1530_v57 = vsel %vm428_vm0, %v2959_v36, 0.0 }
 0x9b2   :  { %1531 = vadd.xlane.f32.xlu1 %v1530_v57  ;;  %v1527_v38 = vsel %vm428_vm0, %v2961_v37, 0.0  ;;  %v1719_v57 = vld [vmem:[#allocation11 + $0x58] sm:$0xff] }
 0x9b3   :  { %1528 = vadd.xlane.f32.xlu0 %v1527_v38 }
 0x9b5   :  { %v2963_v39 = vpop.eup %2962 }
 0x9b6   :  { %v1533_v55 = vsel %vm428_vm0, %v2963_v39, 0.0 }
 0x9b7   :  { %1534 = vadd.xlane.f32.xlu0 %v1533_v55  ;;  %v1721_v55 = vld [vmem:[#allocation11 + $0x68] sm:$0xff] }
 0x9b9   :  { %v2965_v40 = vpop.eup %2964 }
 0x9ba   :  { %v1536_v62 = vsel %vm428_vm0, %v2965_v40, 0.0 }
 0x9bb   :  { %1537 = vadd.xlane.f32.xlu1 %v1536_v62  ;;  %v1722_v62 = vld [vmem:[#allocation11 + $0x70] sm:$0xff] }
 0x9cc   :  { %2906 = vrot.lane.b32.xlu1 %v3393_v5, %s3166_s15 }
 0x9cd   :  { %2901 = vrot.lane.b32.xlu0 %v3391_v3, %s3166_s15 }
 0x9eb   :  { %1012 = vxpose.xlu0.b32.start [1/4] (short) (narrow) %v3473_v48, 32 }
 0x9ef   :  { %1013 = vxpose.xlu0.b32.cont [2/4] (short) (narrow) %v3471_v47, 32 }
 0x9f3   :  { %1014 = vxpose.xlu0.b32.cont [3/4] (short) (narrow) %v3477_v50, 32 }
 0x9f5   :  { %683 = vxpose.xlu1.b32.start [1/4] (short) (narrow) %v3425_v31, 32 }
 0x9f7   :  { %1015 = vxpose.xlu0.b32.end [4/4] (short) (narrow) %v3475_v49, 32 }
 0x9f9   :  { %684 = vxpose.xlu1.b32.cont [2/4] (short) (narrow) %v3423_v30, 32 }
 0x9fb   :  { %1334 = vxpose.xlu0.b32.start [1/4] (short) (narrow) %v1315_v7, 32 }
 0x9fd   :  { %685 = vxpose.xlu1.b32.cont [3/4] (short) (narrow) %v3429_v33, 32 }
 0x9ff   :  { %1335 = vxpose.xlu0.b32.cont [2/4] (short) (narrow) %v2489_v6, 32 }
 0xa01   :  { %686 = vxpose.xlu1.b32.end [4/4] (short) (narrow) %v3427_v32, 32 }
 0xa03   :  { %1336 = vxpose.xlu0.b32.cont [3/4] (short) (narrow) %v1325_v9, 32 }
 0xa07   :  { %1337 = vxpose.xlu0.b32.end [4/4] (short) (narrow) %v2492_v8, 32 }
 0xa3f   :  { %v1532_v5 = vpop.xlane.xlu1 %1531 }
 0xa40   :  { %v1529_v3 = vpop.xlane.xlu0 %1528 }
 0xa41   :  { %2966 = vrcp.f32 %v1529_v3  ;;  %v1723_v3 = vld [vmem:[#allocation11 + $0x78] sm:$0xff] }
 0xa42   :  { %2968 = vrcp.f32 %v1532_v5  ;;  %v2801_v5 = vpack.c.bf16 %v1723_v3, %v1722_v62 }
 0xa44   :  { %v1535_v47 = vpop.xlane.xlu0 %1534 }
 0xa45   :  { %2970 = vrcp.f32 %v1535_v47 }
 0xa48   :  { %v1538_v48 = vpop.xlane.xlu1 %1537  ;;  %v2902_v31 = vpop.permute.xlu0 %2901 }
 0xa49   :  { %v2904_v50 = vunpack.i.h.bf16 %v2902_v31  ;;  %v2903_v49 = vunpack.i.l.bf16 %v2902_v31  ;;  %2972 = vrcp.f32 %v1538_v48 }
 0xa4b   :  { %v2967_v30 = vpop.eup %2966  ;;  %v2765_v61 = vpack.c.bf16 %v2904_v50, %v2903_v49 }
 0xa4c   :  { %v2907_v41 = vpop.permute.xlu1 %2906  ;;  %v1540_v33 = vmul.f32 %v2967_v30, %v2961_v37  ;;  %v2969_v44 = vpop.eup %2968  ;;  %v1718_v37 = vld [vmem:[#allocation11 + $0x50] sm:$0xff] }
 0xa4d   :  { %v2909_v42 = vunpack.i.h.bf16 %v2907_v41  ;;  %v2908_v43 = vunpack.i.l.bf16 %v2907_v41  ;;  %2766 = vmatprep.subr.bf16.mxu0 %v2765_v61  ;;  %v1542_v46 = vmul.f32 %v2969_v44, %v2959_v36  ;;  %v2789_v36 = vpack.c.bf16 %v1717_v35, %v1716_v28  ;;  %v121_v41 = vld [vmem:[#allocation3] sm:$0xff]  ;;  %v1887_v28 = vld [vmem:[#allocation12 + $0x58] sm:$0xff]  ;;  %v1889_v35 = vld [vmem:[#allocation12 + $0x68] sm:$0xff] }
 0xa4e   :  { %2768 = vmatpush3.bf16.msra.mxu0 %v2765_v61  ;;  %2515 = vmatprep.mubr.msk.f32.mxu0 %vm428_vm0, %v1540_v33  ;;  %v2793_v38 = vpack.c.bf16 %v1719_v57, %v1718_v37  ;;  %v1890_v37 = vld [vmem:[#allocation12 + $0x70] sm:$0xff]  ;;  %v1891_v57 = vld [vmem:[#allocation12 + $0x78] sm:$0xff] }
 0xa4f   :  { %v2769_v32 = vpack.c.bf16 %v2909_v42, %v2908_v43  ;;  %v2971_v45 = vpop.eup %2970 }
 0xa50   :  { %v1544_v53 = vmul.f32 %v2971_v45, %v2963_v39  ;;  %v1720_v39 = vld [vmem:[#allocation11 + $0x60] sm:$0xff] }
 0xa51   :  { %2770 = vmatprep.subr.bf16.mxu0 %v2769_v32 }
 0xa52   :  { %2772 = vmatpush3.bf16.msra.mxu0 %v2769_v32 }
 0xa53   :  { %v2973_v51 = vpop.eup %2972  ;;  %2774 = vmatprep.subr.bf16.mxu0 %v2773_v21 }
 0xa54   :  { %v1546_v56 = vmul.f32 %v2973_v51, %v2965_v40  ;;  %v2797_v40 = vpack.c.bf16 %v1721_v55, %v1720_v39  ;;  %v123_v51 = vld [vmem:[#allocation3 + $0x10] sm:$0xff] }
 0xa55   :  { %2516 = vmatmul.mubr.msk.f32.vlgmr.msra.gmra.mrb[16].mxu0 %vm428_vm0, %v1542_v46 }
 0xa56   :  { %2518 = vmatprep.mubr.msk.f32.mxu0 %vm428_vm0, %v1544_v53  ;;  %2776 = vmatpush3.bf16.msra.mxu0 %v2773_v21 }
 0xa57   :  { %2778 = vmatprep.subr.bf16.mxu0 %v2777_v24 }
 0xa59   :  { %2519 = vmatmul.mubr.msk.f32.gmra.mrb[18].mxu0 %vm428_vm0, %v1546_v56  ;;  %v2990_v56 = vld [vmem:[#allocation3 + $0x8] sm:$0xff] }
 0xa5a   :  { %2780 = vmatpush3.bf16.msra.mxu0 %v2777_v24  ;;  %v1883_v24 = vld [vmem:[#allocation12 + $0x38] sm:$0xff] }
 0xa5b   :  { %2782 = vmatprep.subr.bf16.mxu0 %v2781_v54  ;;  %v2817_v25 = vpack.c.bf16 %v1883_v24, %v1882_v23 }
 0xa5e   :  { %2784 = vmatpush3.bf16.msra.mxu0 %v2781_v54  ;;  %v1885_v54 = vld [vmem:[#allocation12 + $0x48] sm:$0xff] }
 0xa5f   :  { %2786 = vmatprep.subr.bf16.mxu0 %v2785_v34  ;;  %v2821_v60 = vpack.c.bf16 %v1885_v54, %v1884_v26 }
 0xa62   :  { %2788 = vmatpush3.bf16.msra.mxu0 %v2785_v34  ;;  %v1888_v34 = vld [vmem:[#allocation12 + $0x60] sm:$0xff] }
 0xa63   :  { %2790 = vmatprep.subr.bf16.mxu0 %v2789_v36 }
 0xa66   :  { %2792 = vmatpush3.bf16.msra.mxu0 %v2789_v36  ;;  %v2829_v36 = vpack.c.bf16 %v1889_v35, %v1888_v34 }
 0xa67   :  { %2794 = vmatprep.subr.bf16.mxu0 %v2793_v38 }
 0xa6a   :  { %2796 = vmatpush3.bf16.msra.mxu0 %v2793_v38  ;;  %v2833_v38 = vpack.c.bf16 %v1891_v57, %v1890_v37 }
 0xa6b   :  { %v1028_v58 = vpop.trf.xlu0  ;;  %2798 = vmatprep.subr.bf16.mxu0 %v2797_v40 }
 0xa6c   :  { %1044 = vst.msk [vmem:[#allocation2 + $0x8] sm:$0xff] %vm428_vm0, %v1028_v58 }
 0xa6e   :  { %2800 = vmatpush3.bf16.msra.mxu0 %v2797_v40 }
 0xa6f   :  { %v1029_v1 = vpop.trf.xlu0  ;;  %2802 = vmatprep.subr.bf16.mxu0 %v2801_v5 }
 0xa72   :  { %2804 = vmatpush3.bf16.msra.mxu0 %v2801_v5 }
 0xa73   :  { %v1030_v4 = vpop.trf.xlu0 }
 0xa75   :  { %v699_v59 = vpop.trf.xlu1 }
 0xa76   :  { %715 = vst.msk [vmem:[#allocation2] sm:$0xff] %vm428_vm0, %v699_v59 }
 0xa77   :  { %v3550_v52 = vpop.trf.xlu0 }
 0xa79   :  { %v700_v63 = vpop.trf.xlu1 }
 0xa7a   :  { %717 = vrot.lane.b32.xlu0 %v700_v63, %s3166_s15 }
 0xa7b   :  { %v1350_v6 = vpop.trf.xlu0 }
 0xa7c   :  { %1366 = vst.msk [vmem:[#allocation2 + $0x10] sm:$0xff] %vm428_vm0, %v1350_v6  ;;  %v1876_v6 = vld [vmem:[#allocation12] sm:$0xff] }
 0xa7d   :  { %v701_v0 = vpop.trf.xlu1 }
 0xa7e   :  { %723 = vrot.lane.b32.xlu1 %v701_v0, %s3165_s14  ;;  %1051 = vrot.lane.b32.xlu0 %v1030_v4, %s3165_s14  ;;  %v2991_v4 = vld [vmem:[#allocation3 + $0x18] sm:$0xff] }
 0xa7f   :  { %v1351_v7 = vpop.trf.xlu0 }
 0xa81   :  { %v702_v2 = vpop.trf.xlu1 }
 0xa82   :  { %1046 = vrot.lane.b32.xlu1 %v1029_v1, %s3166_s15  ;;  %1368 = vrot.lane.b32.xlu0 %v1351_v7, %s3166_s15  ;;  %v1877_v7 = vld [vmem:[#allocation12 + $0x8] sm:$0xff] }
 0xa83   :  { %v3554_v8 = vpop.trf.xlu0 }
 0xa86   :  { %729 = vrot.lane.b32.xlu1 %v702_v2, %s3164_s7 }
 0xa87   :  { %v3556_v9 = vpop.trf.xlu0 }
 0xaec   :  { %v718_v10 = vpop.permute.xlu0 %717 }
 0xaed   :  { %721 = vst.msk [vmem:[#allocation2] sm:$0xff] %vm720_vm2, %v718_v10  ;;  %v1879_v10 = vld [vmem:[#allocation12 + $0x18] sm:$0xff] }
 0xaf0   :  { %v724_v11 = vpop.permute.xlu1 %723  ;;  %v1052_v29 = vpop.permute.xlu0 %1051 }
 0xaf1   :  { %727 = vst.msk [vmem:[#allocation2] sm:$0xff] %vm726_vm3, %v724_v11 }
 0xaf4   :  { %v1047_v12 = vpop.permute.xlu1 %1046  ;;  %v1369_v47 = vpop.permute.xlu0 %1368 }
 0xaf5   :  { %1049 = vst.msk [vmem:[#allocation2 + $0x8] sm:$0xff] %vm720_vm2, %v1047_v12  ;;  %1371 = vst.msk [vmem:[#allocation2 + $0x10] sm:$0xff] %vm720_vm2, %v1369_v47  ;;  %v1880_v12 = vld [vmem:[#allocation12 + $0x20] sm:$0xff] }
 0xaf6   :  { %1054 = vst.msk [vmem:[#allocation2 + $0x8] sm:$0xff] %vm726_vm3, %v1052_v29  ;;  %v2825_v29 = vpack.c.bf16 %v1887_v28, %v1886_v27 }
 0xaf8   :  { %v730_v13 = vpop.permute.xlu1 %729 }
 0xaf9   :  { %733 = vst.msk [vmem:[#allocation2] sm:$0xff] %vm732_vm4, %v730_v13  ;;  %v1881_v13 = vld [vmem:[#allocation12 + $0x28] sm:$0xff] }
 0xb00   :  { %v1704_v14 = vld [vmem:[#allocation2] sm:$0xff] }
 0xb01   :  { %2553 = vmatprep.mubr.f32.mxu0 %v1704_v14  ;;  %v2813_v14 = vpack.c.bf16 %v1881_v13, %v1880_v12  ;;  %v2128_v12 = vld [vmem:[%s3618_s8] ss:$0 sm:$0xff] }
 0xb28   :  { %v2517_v15 = vpop.f32.mrb[16].mxu0 }
 0xb29   :  { %v1637_v16 = vpop.f32.mrb[17].mxu0 }
 0xb2a   :  { %1656 = vxpose.xlu1.b32.start [1/4] (short) (narrow) %v1637_v16, 32 }
 0xb2c   :  { %v2520_v17 = vpop.f32.mrb[18].mxu0 }
 0xb2d   :  { %v1647_v20 = vpop.f32.mrb[19].mxu0 }
 0xb2e   :  { %1657 = vxpose.xlu1.b32.cont [2/4] (short) (narrow) %v2517_v15, 32 }
 0xb32   :  { %1658 = vxpose.xlu1.b32.cont [3/4] (short) (narrow) %v1647_v20, 32 }
 0xb36   :  { %1659 = vxpose.xlu1.b32.end [4/4] (short) (narrow) %v2520_v17, 32 }
 0xb54   :  { %1056 = vrot.lane.b32.xlu1 %v3550_v52, %s3164_s7 }
 0xb58   :  { %1373 = vrot.lane.b32.xlu1 %v3554_v8, %s3165_s14  ;;  %v1878_v8 = vld [vmem:[#allocation12 + $0x10] sm:$0xff] }
 0xb59   :  { %v2809_v11 = vpack.c.bf16 %v1879_v10, %v1878_v8 }
 0xb5c   :  { %1378 = vrot.lane.b32.xlu1 %v3556_v9, %s3164_s7  ;;  %v2805_v9 = vpack.c.bf16 %v1877_v7, %v1876_v6 }
 0xb5e   :  { %2806 = vmatprep.subr.bf16.mxu1 %v2805_v9 }
 0xb5f   :  { %2808 = vmatpush3.bf16.msra.mxu1 %v2805_v9 }
 0xb60   :  { %2810 = vmatprep.subr.bf16.mxu1 %v2809_v11 }
 0xb63   :  { %2812 = vmatpush3.bf16.msra.mxu1 %v2809_v11 }
 0xb64   :  { %2814 = vmatprep.subr.bf16.mxu1 %v2813_v14 }
 0xb67   :  { %2816 = vmatpush3.bf16.msra.mxu1 %v2813_v14 }
 0xb68   :  { %2818 = vmatprep.subr.bf16.mxu1 %v2817_v25 }
 0xb6b   :  { %2820 = vmatpush3.bf16.msra.mxu1 %v2817_v25 }
 0xb6c   :  { %2822 = vmatprep.subr.bf16.mxu1 %v2821_v60 }
 0xb6f   :  { %2824 = vmatpush3.bf16.msra.mxu1 %v2821_v60 }
 0xb70   :  { %2826 = vmatprep.subr.bf16.mxu1 %v2825_v29 }
 0xb73   :  { %2828 = vmatpush3.bf16.msra.mxu1 %v2825_v29 }
 0xb74   :  { %2830 = vmatprep.subr.bf16.mxu1 %v2829_v36 }
 0xb77   :  { %2832 = vmatpush3.bf16.msra.mxu1 %v2829_v36 }
 0xb78   :  { %2834 = vmatprep.subr.bf16.mxu1 %v2833_v38 }
 0xb7b   :  { %2836 = vmatpush3.bf16.msra.mxu1 %v2833_v38 }
 0xbaa   :  { %v1672_v48 = vpop.trf.xlu1 }
 0xbab   :  { %1688 = vst.msk [vmem:[#allocation2 + $0x18] sm:$0xff] %vm428_vm0, %v1672_v48 }
 0xbae   :  { %v1673_v31 = vpop.trf.xlu1 }
 0xbaf   :  { %1690 = vrot.lane.b32.xlu0 %v1673_v31, %s3166_s15 }
 0xbb2   :  { %v1674_v50 = vpop.trf.xlu1 }
 0xbb3   :  { %1695 = vrot.lane.b32.xlu0 %v1674_v50, %s3165_s14 }
 0xbb6   :  { %v1675_v49 = vpop.trf.xlu1 }
 0xbb7   :  { %1700 = vrot.lane.b32.xlu1 %v1675_v49, %s3164_s7 }
 0xbc6   :  { %v1057_v30 = vpop.permute.xlu1 %1056 }
 0xbc7   :  { %1059 = vst.msk [vmem:[#allocation2 + $0x8] sm:$0xff] %vm732_vm4, %v1057_v30 }
 0xbca   :  { %v1374_v61 = vpop.permute.xlu1 %1373 }
 0xbcb   :  { %1376 = vst.msk [vmem:[#allocation2 + $0x10] sm:$0xff] %vm726_vm3, %v1374_v61 }
 0xbce   :  { %v1705_v33 = vld [vmem:[#allocation2 + $0x8] sm:$0xff]  ;;  %v1379_v42 = vpop.permute.xlu1 %1378 }
 0xbcf   :  { %2554 = vmatmul.mubr.f32.vlgmr.msra.gmra.mrb[20].mxu0 %v1705_v33  ;;  %1381 = vst.msk [vmem:[#allocation2 + $0x10] sm:$0xff] %vm732_vm4, %v1379_v42  ;;  %v2126_v42 = vld [vmem:[%s3615_s5] ss:$0 sm:$0xff] }
 0xbd0   :  { %2327 = vmatprep.mubr.f32.mxu0 %v121_v41 }
 0xbd1   :  { %2365 = vmatprep.mubr.f32.mxu0 %v121_v41 }
 0xbd2   :  { %2403 = vmatprep.mubr.f32.mxu0 %v121_v41 }
 0xbd6   :  { %v1706_v43 = vld [vmem:[#allocation2 + $0x10] sm:$0xff] }
 0xbd7   :  { %2556 = vmatprep.mubr.f32.mxu0 %v1706_v43 }
 0xc21   :  { %v1691_v32 = vpop.permute.xlu0 %1690 }
 0xc22   :  { %1693 = vst.msk [vmem:[#allocation2 + $0x18] sm:$0xff] %vm720_vm2, %v1691_v32 }
 0xc25   :  { %v1696_v44 = vpop.permute.xlu0 %1695 }
 0xc26   :  { %1698 = vst.msk [vmem:[#allocation2 + $0x18] sm:$0xff] %vm726_vm3, %v1696_v44 }
 0xc29   :  { %v1701_v45 = vpop.permute.xlu1 %1700 }
 0xc2a   :  { %1703 = vst.msk [vmem:[#allocation2 + $0x18] sm:$0xff] %vm732_vm4, %v1701_v45  ;;  %v2127_v45 = vld [vmem:[%s3616_s6] ss:$0 sm:$0xff] }
 0xc31   :  { %v1707_v46 = vld [vmem:[#allocation2 + $0x18] sm:$0xff] }
 0xc32   :  { %2557 = vmatmul.mubr.f32.gmra.mrb[22].mxu0 %v1707_v46 }
 0xc33   :  { %2330 = vmatprep.mubr.f32.mxu0 %v123_v51 }
 0xc34   :  { %2368 = vmatprep.mubr.f32.mxu0 %v123_v51 }
 0xc35   :  { %2406 = vmatprep.mubr.f32.mxu0 %v123_v51 }
 0xca2   :  { %v2555_v53 = vpop.f32.mrb[20].mxu0 }
 0xca3   :  { %v1796_v58 = vadd.f32 %v2990_v56, %v2555_v53  ;;  %v1790_v59 = vpop.f32.mrb[21].mxu0 }
 0xca4   :  { %v1791_v63 = vadd.f32 %v1790_v59, %v121_v41 }
 0xca5   :  { %1813 = vadd.xlane.f32.xlu1 %v1796_v58 }
 0xca6   :  { %1811 = vadd.xlane.f32.xlu0 %v1791_v63 }
 0xd05   :  { %v2558_v0 = vpop.f32.mrb[22].mxu0 }
 0xd06   :  { %v1800_v1 = vpop.f32.mrb[23].mxu0  ;;  %v1806_v52 = vadd.f32 %v2991_v4, %v2558_v0 }
 0xd07   :  { %v1801_v2 = vadd.f32 %v1800_v1, %v123_v51 }
 0xd09   :  { %1815 = vadd.xlane.f32.xlu0 %v1801_v2 }
 0xd0d   :  { %1817 = vadd.xlane.f32.xlu0 %v1806_v52 }
 0xd32   :  { %v1814_v15 = vpop.xlane.xlu1 %1813 }
 0xd33   :  { %v1821_v16 = vmul.f32 0.0078125, %v1814_v15  ;;  %v1812_v17 = vpop.xlane.xlu0 %1811 }
 0xd34   :  { %v1820_v18 = vmul.f32 0.0078125, %v1812_v17 }
 0xd35   :  { %v1825_v19 = vsub.f32 %v1796_v58, %v1821_v16 }
 0xd36   :  { %v1824_v20 = vsub.f32 %v1791_v63, %v1820_v18 }
 0xd37   :  { %v1829_v21 = vmul.f32 %v1825_v19, %v1825_v19 }
 0xd38   :  { %v1828_v22 = vmul.f32 %v1824_v20, %v1824_v20 }
 0xd39   :  { %1834 = vadd.xlane.f32.xlu1 %v1829_v21 }
 0xd3a   :  { %1832 = vadd.xlane.f32.xlu0 %v1828_v22 }
 0xd96   :  { %v1816_v39 = vpop.xlane.xlu0 %1815 }
 0xd97   :  { %v1822_v55 = vmul.f32 0.0078125, %v1816_v39 }
 0xd99   :  { %v1826_v40 = vsub.f32 %v1801_v2, %v1822_v55 }
 0xd9a   :  { %v1818_v62 = vpop.xlane.xlu0 %1817 }
 0xd9b   :  { %v1823_v3 = vmul.f32 0.0078125, %v1818_v62  ;;  %v1830_v5 = vmul.f32 %v1826_v40, %v1826_v40 }
 0xd9d   :  { %v1827_v47 = vsub.f32 %v1806_v52, %v1823_v3  ;;  %1836 = vadd.xlane.f32.xlu0 %v1830_v5 }
 0xd9f   :  { %v1831_v48 = vmul.f32 %v1827_v47, %v1827_v47 }
 0xda1   :  { %1838 = vadd.xlane.f32.xlu1 %v1831_v48 }
 0xdc6   :  { %v1835_v31 = vpop.xlane.xlu1 %1834 }
 0xdc7   :  { %v1841_v50 = vmul.f32 0.0078125, %v1835_v31  ;;  %v1833_v49 = vpop.xlane.xlu0 %1832 }
 0xdc8   :  { %v1840_v30 = vmul.f32 0.0078125, %v1833_v49  ;;  %v2129_v49 = vld [vmem:[%s3619_s9] ss:$0 sm:$0xff]  ;;  %s3167_s9 = smov [#allocation14]  }
 0xdc9   :  { %v1845_v61 = vadd.f32 1e-05, %v1841_v50 }
 0xdca   :  { %v1844_v41 = vadd.f32 1e-05, %v1840_v30 }
 0xdcb   :  { %2974 = vrsqrt.f32 %v1845_v61 }
 0xdcc   :  { %2976 = vrsqrt.f32 %v1844_v41 }
 0xdd5   :  { %v2975_v33 = vpop.eup %2974 }
 0xdd6   :  { %v2977_v43 = vpop.eup %2976  ;;  %v1853_v32 = vmul.f32 %v2975_v33, %v1825_v19  ;;  %v2130_v33 = vld [vmem:[%s3620_s10] ss:$0 sm:$0xff]  ;;  %s2063_s10 = sshll.u32 %s3167_s9, 4  ;;  %s2064_s10 = int_to_ptr.vmem [resolvable:$true] %s2063_s10 }
 0xdd7   :  { %v1852_v44 = vmul.f32 %v2977_v43, %v1824_v20  ;;  %s3124_s2 = scalar_lea.vmem %s2064_s10, 512  ;;  %p3129_p7 = scmp.lt.s32.totalorder %s2064_s10, %s2064_s10 }
 0xdd8   :  { %v1863_v46 = vmul.f32 %v2126_v42, %v1853_v32  ;;  %p3125_p6 = scmp.ne.s32.totalorder %s2064_s10, %s3124_s2  ;;  %p3130_p8 = scmp.lt.s32.totalorder %s3124_s2, %s3124_s2 }
 0xdd9   :  { %v1862_v51 = vmul.f32 %v2126_v42, %v1852_v44 }
 0xdda   :  { %v1873_v56 = vadd.f32 %v2127_v45, %v1863_v46  ;;  %p3131_p9 = por %p3130_p8, %p3129_p7 }
 0xddb   :  { %v1872_v53 = vadd.f32 %v2127_v45, %v1862_v51 }
 0xddc   :  { %p3132_p10 = pnand %p3131_p9, %p3125_p6 }
 0xddd   :  { %2591 = vmatprep.mubr.f32.mxu1 %v1872_v53 }
 0xdde   :  { %2592 = vmatmul.mubr.f32.vlgmr.msra.gmra.mrb[24].mxu1 %v1873_v56 }
 0xe2a   :  { %v1837_v58 = vpop.xlane.xlu0 %1836 }
 0xe2b   :  { %v1842_v59 = vmul.f32 0.0078125, %v1837_v58 }
 0xe2d   :  { %v1846_v63 = vadd.f32 1e-05, %v1842_v59 }
 0xe2e   :  { %v1839_v0 = vpop.xlane.xlu1 %1838 }
 0xe2f   :  { %2978 = vrsqrt.f32 %v1846_v63  ;;  %v1843_v1 = vmul.f32 0.0078125, %v1839_v0 }
 0xe31   :  { %v1847_v2 = vadd.f32 1e-05, %v1843_v1 }
 0xe33   :  { %2980 = vrsqrt.f32 %v1847_v2 }
 0xe39   :  { %v2979_v4 = vpop.eup %2978 }
 0xe3a   :  { %v1854_v52 = vmul.f32 %v2979_v4, %v1826_v40 }
 0xe3c   :  { %v1864_v6 = vmul.f32 %v2126_v42, %v1854_v52 }
 0xe3d   :  { %v2981_v7 = vpop.eup %2980 }
 0xe3e   :  { %v1874_v8 = vadd.f32 %v2127_v45, %v1864_v6  ;;  %v1855_v9 = vmul.f32 %v2981_v7, %v1827_v47 }
 0xe40   :  { %2594 = vmatprep.mubr.f32.mxu1 %v1874_v8  ;;  %v1865_v10 = vmul.f32 %v2126_v42, %v1855_v9 }
 0xe42   :  { %v1875_v11 = vadd.f32 %v2127_v45, %v1865_v10 }
 0xe44   :  { %2595 = vmatmul.mubr.f32.gmra.mrb[26].mxu1 %v1875_v11 }
 0xeb1   :  { %v2593_v13 = vpop.f32.mrb[24].mxu1 }
 0xeb2   :  { %v1971_v14 = vadd.f32 %v2593_v13, %v2128_v12  ;;  %v1965_v15 = vpop.f32.mrb[25].mxu1 }
 0xeb3   :  { %v1966_v16 = vadd.f32 %v2128_v12, %v1965_v15 }
 0xeb4   :  { %v1985_v17 = vadd.f32 %v1971_v14, %v1873_v56 }
 0xeb5   :  { %v1984_v18 = vadd.f32 %v1966_v16, %v1872_v53 }
 0xeb6   :  { %1992 = vadd.xlane.f32.xlu1 %v1985_v17 }
 0xeb7   :  { %1990 = vadd.xlane.f32.xlu0 %v1984_v18 }
 0xf17   :  { %v2596_v19 = vpop.f32.mrb[26].mxu1 }
 0xf18   :  { %v1981_v20 = vadd.f32 %v2596_v19, %v2128_v12  ;;  %v1975_v21 = vpop.f32.mrb[27].mxu1 }
 0xf19   :  { %v1976_v22 = vadd.f32 %v2128_v12, %v1975_v21 }
 0xf1a   :  { %v1987_v23 = vadd.f32 %v1981_v20, %v1875_v11 }
 0xf1b   :  { %v1986_v24 = vadd.f32 %v1976_v22, %v1874_v8 }
 0xf1c   :  { %1996 = vadd.xlane.f32.xlu1 %v1987_v23 }
 0xf1d   :  { %1994 = vadd.xlane.f32.xlu0 %v1986_v24 }
 0xf43   :  { %v1993_v25 = vpop.xlane.xlu1 %1992 }
 0xf44   :  { %v1999_v26 = vmul.f32 0.0078125, %v1993_v25  ;;  %v1991_v54 = vpop.xlane.xlu0 %1990 }
 0xf45   :  { %v1998_v60 = vmul.f32 0.0078125, %v1991_v54 }
 0xf46   :  { %v2003_v27 = vsub.f32 %v1985_v17, %v1999_v26 }
 0xf47   :  { %v2002_v28 = vsub.f32 %v1984_v18, %v1998_v60 }
 0xf48   :  { %v2007_v29 = vmul.f32 %v2003_v27, %v2003_v27 }
 0xf49   :  { %v2006_v34 = vmul.f32 %v2002_v28, %v2002_v28 }
 0xf4a   :  { %2012 = vadd.xlane.f32.xlu1 %v2007_v29 }
 0xf4b   :  { %2010 = vadd.xlane.f32.xlu0 %v2006_v34 }
 0xfa9   :  { %v1997_v35 = vpop.xlane.xlu1 %1996 }
 0xfaa   :  { %v2001_v36 = vmul.f32 0.0078125, %v1997_v35  ;;  %v1995_v37 = vpop.xlane.xlu0 %1994 }
 0xfab   :  { %v2000_v57 = vmul.f32 0.0078125, %v1995_v37 }
 0xfac   :  { %v2005_v38 = vsub.f32 %v1987_v23, %v2001_v36 }
 0xfad   :  { %v2004_v39 = vsub.f32 %v1986_v24, %v2000_v57 }
 0xfae   :  { %v2009_v55 = vmul.f32 %v2005_v38, %v2005_v38 }
 0xfaf   :  { %v2008_v40 = vmul.f32 %v2004_v39, %v2004_v39 }
 0xfb0   :  { %2016 = vadd.xlane.f32.xlu1 %v2009_v55 }
 0xfb1   :  { %2014 = vadd.xlane.f32.xlu0 %v2008_v40 }
 0xfd7   :  { %v2013_v62 = vpop.xlane.xlu1 %2012 }
 0xfd8   :  { %v2019_v3 = vmul.f32 0.0078125, %v2013_v62  ;;  %v2011_v5 = vpop.xlane.xlu0 %2010 }
 0xfd9   :  { %v2018_v47 = vmul.f32 0.0078125, %v2011_v5 }
 0xfda   :  { %v2023_v48 = vadd.f32 1e-05, %v2019_v3 }
 0xfdb   :  { %v2022_v31 = vadd.f32 1e-05, %v2018_v47 }
 0xfdc   :  { %2982 = vrsqrt.f32 %v2023_v48 }
 0xfdd   :  { %2984 = vrsqrt.f32 %v2022_v31 }
 0xfe6   :  { %v2983_v50 = vpop.eup %2982 }
 0xfe7   :  { %v2985_v30 = vpop.eup %2984  ;;  %v2031_v61 = vmul.f32 %v2983_v50, %v2003_v27 }
 0xfe8   :  { %v2030_v41 = vmul.f32 %v2985_v30, %v2002_v28 }
 0xfe9   :  { %v2041_v42 = vmul.f32 %v2129_v49, %v2031_v61 }
 0xfea   :  { %v2040_v43 = vmul.f32 %v2129_v49, %v2030_v41 }
 0xfeb   :  { %v2051_v32 = vadd.f32 %v2130_v33, %v2041_v42 }
 0xfec   :  { %v2050_v44 = vadd.f32 %v2130_v33, %v2040_v43 }
 0xfed   :  { %2055 = vst [vmem:[#allocation14 + $0x8] sm:$0xff] %v2051_v32 }
 0xfee   :  { %2054 = vst [vmem:[#allocation14] sm:$0xff] %v2050_v44 }
0x103d   :  { %v2017_v45 = vpop.xlane.xlu1 %2016 }
0x103e   :  { %v2021_v46 = vmul.f32 0.0078125, %v2017_v45  ;;  %v2015_v51 = vpop.xlane.xlu0 %2014 }
0x103f   :  { %v2020_v53 = vmul.f32 0.0078125, %v2015_v51 }
0x1040   :  { %v2025_v56 = vadd.f32 1e-05, %v2021_v46 }
0x1041   :  { %v2024_v58 = vadd.f32 1e-05, %v2020_v53 }
0x1042   :  { %2986 = vrsqrt.f32 %v2025_v56 }
0x1043   :  { %2988 = vrsqrt.f32 %v2024_v58 }
0x104c   :  { %v2987_v59 = vpop.eup %2986 }
0x104d   :  { %v2989_v63 = vpop.eup %2988  ;;  %v2033_v0 = vmul.f32 %v2987_v59, %v2005_v38 }
0x104e   :  { %v2032_v1 = vmul.f32 %v2989_v63, %v2004_v39 }
0x104f   :  { %v2043_v2 = vmul.f32 %v2129_v49, %v2033_v0 }
0x1050   :  { %v2042_v4 = vmul.f32 %v2129_v49, %v2032_v1 }
0x1051   :  { %v2053_v52 = vadd.f32 %v2130_v33, %v2043_v2 }
0x1052   :  { %v2052_v6 = vadd.f32 %v2130_v33, %v2042_v4 }
0x1053   :  { %2057 = vst [vmem:[#allocation14 + $0x18] sm:$0xff] %v2053_v52 }
0x1054   :  { %2056 = vst [vmem:[#allocation14 + $0x10] sm:$0xff] %v2052_v6 }
0x1055   :  { %3135 = shalt.err (!%p3132_p10)
}
0x1056   :  { %s3136_s1 = scalar_lea.hbm %s3621_s11, 512 }
0x1057   :  { %p3137_p11 = scmp.ne.s32.totalorder %s3621_s11, %s3136_s1  ;;  %p3140_p12 = scmp.lt.u32.totalorder %s3136_s1, %s3621_s11 }
0x1059   :  { %p3142_p13 = pnand %p3140_p12, %p3137_p11 }
0x105b   :  { %3145 = shalt.err (!%p3142_p13)
}
0x105c   :  { %2069 = dma.vmem_to_hbm [thread:$0]  %s2064_s10, 512, %s3621_s11, [#allocation5], %s3158_s29, %s3158_s29, %s3159_s30  }
0x105d   :  { %3154 = dma.done.wait [#allocation5], 512  }
0x105e   :  { %3155 = vsyncadd [#allocation5], 4294966784 }
0x105f   :  { %2073 = vsyncpa [#allocation4], 1 }
0x1060   :  { %2074 = vsyncpa [#allocation7], 1 }
0x1061   :  { %2075 = vsyncpa [#allocation10], 1 }
0x1062   :  { %2076 = vsyncpa [#allocation13], 1 }
0x1063   :  { %2077 = vsyncpa [#allocation5], 1 }

</bundles_post_ra>
